<compile_context>
chip_gen: v5e
topology: v5e:2x2
jax: 0.10.0
libtpu: 0.0.40
codegen_flags: <defaults>
</compile_context>

<pallas_src>
import functools

import jax
import jax.numpy as jnp
from jax.experimental import pallas as pl
from jax.experimental.pallas import tpu as pltpu


def _pick_vmem_limit():
    # ~96 MiB on v5e/v6e (128 MiB physical), ~48 MiB on v7x (64 MiB physical).
    try:
        cap = pltpu.get_tpu_info().vmem_capacity_bytes
        return min(96 * 1024 * 1024, int(cap) * 3 // 4)
    except Exception:
        return 48 * 1024 * 1024


_VMEM_LIMIT = _pick_vmem_limit()


def _pick_tile(dim, cap, align):
    """Largest tile <= cap that divides dim and is `align`-aligned, else full dim."""
    if dim <= cap:
        return dim
    t = (cap // align) * align
    while t >= align:
        if dim % t == 0:
            return t
        t -= align
    return dim


# ----------------------------------------------------------------------------
# Tiled matmul (+bias, +activation) kernel
# ----------------------------------------------------------------------------
def _matmul_kernel(x_ref, w_ref, b_ref, o_ref, acc_ref, *, act, k_axis):
    @pl.when(pl.program_id(k_axis) == 0)
    def _():
        acc_ref[...] = jnp.zeros_like(acc_ref)

    xb = x_ref[...]
    if xb.dtype != jnp.bfloat16:
        xb = xb.astype(jnp.bfloat16)
    wb = w_ref[...]
    if wb.dtype != jnp.bfloat16:
        wb = wb.astype(jnp.bfloat16)
    acc_ref[...] += jnp.dot(xb, wb, preferred_element_type=jnp.float32)

    @pl.when(pl.program_id(k_axis) == pl.num_programs(k_axis) - 1)
    def _():
        y = acc_ref[...] + b_ref[...]
        if act == "gelu":
            # TODO(synk): PyTorch F.gelu is erf-exact; the tanh-approximate GELU
            # is used because erf is not guaranteed to lower through Mosaic.
            c = jnp.float32(0.7978845608028654)  # sqrt(2/pi)
            y = 0.5 * y * (1.0 + jnp.tanh(c * (y + 0.044715 * y * y * y)))
        o_ref[...] = y.astype(o_ref.dtype)


def linear(x, w, b=None, act="none", out_dtype=jnp.float32,
           tm_cap=256, tn_cap=768, tk_cap=1024):
    """x:(M,K) f32/bf16, w:(K,N) bf16/f32 -> (M,N) out_dtype."""
    M, K = x.shape
    N = w.shape[1]
    tm = _pick_tile(M, tm_cap, 8)
    tn = _pick_tile(N, tn_cap, 128)
    tk = _pick_tile(K, tk_cap, 128)
    if b is None:
        b = jnp.zeros((N,), jnp.float32)
    b2 = b.reshape(1, N).astype(jnp.float32)

    return pl.pallas_call(
        functools.partial(_matmul_kernel, act=act, k_axis=2),
        out_shape=jax.ShapeDtypeStruct((M, N), out_dtype),
        grid_spec=pltpu.PrefetchScalarGridSpec(
            num_scalar_prefetch=0,
            grid=(M // tm, N // tn, K // tk),
            in_specs=[pl.BlockSpec((tm, tk), lambda i, j, k: (i, k)),
                      pl.BlockSpec((tk, tn), lambda i, j, k: (k, j)),
                      pl.BlockSpec((1, tn), lambda i, j, k: (0, j))],
            out_specs=pl.BlockSpec((tm, tn), lambda i, j, k: (i, j)),
            scratch_shapes=[pltpu.VMEM((tm, tn), jnp.float32)]),
        compiler_params=pltpu.CompilerParams(
            dimension_semantics=("parallel", "parallel", "arbitrary"),
            vmem_limit_bytes=_VMEM_LIMIT),
    )(x, w, b2)


# ----------------------------------------------------------------------------
# Fused QKV projection: (M,D) @ (3,D,HD) -> (3, M, HD) bf16, one pallas_call
# ----------------------------------------------------------------------------
def qkv_linear(x, wqkv, bqkv, tm_cap=256, tk_cap=1024):
    """x:(M,D); wqkv:(3,D,HD) bf16; bqkv:(3,1,HD) f32 -> (3,M,HD) bf16."""
    M, K = x.shape
    HD = wqkv.shape[2]
    tm = _pick_tile(M, tm_cap, 8)
    tk = _pick_tile(K, tk_cap, 128)
    return pl.pallas_call(
        functools.partial(_matmul_kernel, act="none", k_axis=2),
        out_shape=jax.ShapeDtypeStruct((3, M, HD), jnp.bfloat16),
        grid_spec=pltpu.PrefetchScalarGridSpec(
            num_scalar_prefetch=0,
            grid=(3, M // tm, K // tk),
            in_specs=[pl.BlockSpec((tm, tk), lambda q, i, k: (i, k)),
                      pl.BlockSpec((None, tk, HD), lambda q, i, k: (q, k, 0)),
                      pl.BlockSpec((None, 1, HD), lambda q, i, k: (q, 0, 0))],
            out_specs=pl.BlockSpec((None, tm, HD), lambda q, i, k: (q, i, 0)),
            scratch_shapes=[pltpu.VMEM((tm, HD), jnp.float32)]),
        compiler_params=pltpu.CompilerParams(
            dimension_semantics=("parallel", "parallel", "arbitrary"),
            vmem_limit_bytes=_VMEM_LIMIT),
    )(x, wqkv, bqkv)


# ----------------------------------------------------------------------------
# Matmul with fused bias + residual-add + LayerNorm finalize (tn = full N)
# ----------------------------------------------------------------------------
def _matmul_addln_kernel(x_ref, w_ref, b_ref, r_ref, g_ref, be_ref,
                         o_ref, acc_ref, *, eps):
    @pl.when(pl.program_id(1) == 0)
    def _():
        acc_ref[...] = jnp.zeros_like(acc_ref)

    xb = x_ref[...]
    if xb.dtype != jnp.bfloat16:
        xb = xb.astype(jnp.bfloat16)
    wb = w_ref[...]
    if wb.dtype != jnp.bfloat16:
        wb = wb.astype(jnp.bfloat16)
    acc_ref[...] += jnp.dot(xb, wb, preferred_element_type=jnp.float32)

    @pl.when(pl.program_id(1) == pl.num_programs(1) - 1)
    def _():
        y = acc_ref[...] + b_ref[...] + r_ref[...]      # bias + residual (f32)
        mu = jnp.mean(y, axis=-1, keepdims=True)
        yc = y - mu
        var = jnp.mean(yc * yc, axis=-1, keepdims=True)
        o_ref[...] = yc * jax.lax.rsqrt(var + eps) * g_ref[...] + be_ref[...]


def linear_add_ln(x, w, b, resid, gamma, beta, eps, tm_cap=256, tk_cap=1024):
    """LayerNorm(x @ w + b + resid): x (M,K), w (K,N), resid (M,N) f32 -> (M,N) f32."""
    M, K = x.shape
    N = w.shape[1]
    tm = _pick_tile(M, tm_cap, 8)
    tk = _pick_tile(K, tk_cap, 128)
    return pl.pallas_call(
        functools.partial(_matmul_addln_kernel, eps=float(eps)),
        out_shape=jax.ShapeDtypeStruct((M, N), jnp.float32),
        grid_spec=pltpu.PrefetchScalarGridSpec(
            num_scalar_prefetch=0,
            grid=(M // tm, K // tk),
            in_specs=[pl.BlockSpec((tm, tk), lambda i, k: (i, k)),
                      pl.BlockSpec((tk, N), lambda i, k: (k, 0)),
                      pl.BlockSpec((1, N), lambda i, k: (0, 0)),
                      pl.BlockSpec((tm, N), lambda i, k: (i, 0)),
                      pl.BlockSpec((1, N), lambda i, k: (0, 0)),
                      pl.BlockSpec((1, N), lambda i, k: (0, 0))],
            out_specs=pl.BlockSpec((tm, N), lambda i, k: (i, 0)),
            scratch_shapes=[pltpu.VMEM((tm, N), jnp.float32)]),
        compiler_params=pltpu.CompilerParams(
            dimension_semantics=("parallel", "arbitrary"),
            vmem_limit_bytes=_VMEM_LIMIT),
    )(x, w, b.reshape(1, N).astype(jnp.float32), resid,
      gamma.reshape(1, N).astype(jnp.float32), beta.reshape(1, N).astype(jnp.float32))


# ----------------------------------------------------------------------------
# Attention kernel: grid=(B, n_head//G), G heads per program, bf16 in/out ctx
# ----------------------------------------------------------------------------
def _attention_kernel(q_ref, k_ref, v_ref, bias_ref, ctx_ref, *prob_refs,
                      heads, d_head, scale, with_prob):
    prob_ref = prob_refs[0] if with_prob else None
    bias = bias_ref[...]                          # (1, S) f32 additive key-pad bias
    for h in range(heads):                        # small static unroll (G heads)
        sl = slice(h * d_head, (h + 1) * d_head)
        q = q_ref[:, sl]                          # (S, Dh) bf16
        k = k_ref[:, sl]
        v = v_ref[:, sl]
        # Q @ K^T contracting d_head, f32 accumulation on the MXU.
        scores = jax.lax.dot_general(
            q, k, dimension_numbers=(((1,), (1,)), ((), ())),
            preferred_element_type=jnp.float32)                   # (S, S)
        scores = scores * scale + bias            # scale + mask in one VPU pass
        smax = jnp.max(scores, axis=-1, keepdims=True)
        e = jnp.exp(scores - smax)
        denom = jnp.sum(e, axis=-1, keepdims=True)
        p = e * pl.reciprocal(denom, approx=True)                 # EUP division
        if with_prob:
            prob_ref[h] = p                                       # f32 probs
        ctx = jnp.dot(p.astype(jnp.bfloat16), v,
                      preferred_element_type=jnp.float32)         # (S, Dh)
        ctx_ref[:, sl] = ctx.astype(ctx_ref.dtype)


def _heads_per_block(n_head, d_head):
    """Heads per program: 128-lane-aligned groups when possible, else all heads."""
    hd = n_head * d_head
    if hd % 128 == 0 and 128 % d_head == 0:
        g = 128 // d_head
        if g <= n_head and n_head % g == 0:
            return g
    return n_head


def attention(qkv3, attn_bias, n_head, d_head, scale, return_probs=True):
    """qkv3: (3, B, S, H*Dh) bf16; attn_bias: (B, 1, S) f32 additive key-pad bias.

    Returns context (B, S, H*Dh) bf16 (token-major) and optional f32 probs
    (B, H, S, S).
    """
    _, B, S, HD = qkv3.shape
    G = _heads_per_block(n_head, d_head)
    HG = n_head // G
    GD = G * d_head

    out_shapes = [jax.ShapeDtypeStruct((B, S, HD), jnp.bfloat16)]
    out_specs = [pl.BlockSpec((None, S, GD), lambda b, hg: (b, 0, hg))]
    if return_probs:
        out_shapes.append(jax.ShapeDtypeStruct((B, n_head, S, S), jnp.float32))
        out_specs.append(pl.BlockSpec((None, G, S, S), lambda b, hg: (b, hg, 0, 0)))

    outs = pl.pallas_call(
        functools.partial(_attention_kernel, heads=G, d_head=d_head,
                          scale=float(scale), with_prob=return_probs),
        out_shape=tuple(out_shapes),
        grid=(B, HG),
        in_specs=[
            # Three views of the same (3,B,S,HD) activation: Q / K / V head-group.
            pl.BlockSpec((None, None, S, GD), lambda b, hg: (0, b, 0, hg)),
            pl.BlockSpec((None, None, S, GD), lambda b, hg: (1, b, 0, hg)),
            pl.BlockSpec((None, None, S, GD), lambda b, hg: (2, b, 0, hg)),
            pl.BlockSpec((None, 1, S), lambda b, hg: (b, 0, 0)),
        ],
        out_specs=tuple(out_specs),
        compiler_params=pltpu.CompilerParams(
            dimension_semantics=("parallel", "parallel"),
            vmem_limit_bytes=_VMEM_LIMIT),
    )(qkv3, qkv3, qkv3, attn_bias)
    ctx = outs[0]
    prob = outs[1] if return_probs else None
    return ctx, prob


# ----------------------------------------------------------------------------
# Parameters (deterministic synthetic init; matmul weights stored bf16)
# ----------------------------------------------------------------------------
def init_params(key, cfg):
    def nrm(k, shape, dtype=jnp.float32):
        return (0.02 * jax.random.normal(k, shape, jnp.float32)).astype(dtype)

    D = cfg["d_hidn"]
    HD = cfg["n_head"] * cfg["d_head"]
    DFF = cfg["d_ff"]
    bf16 = jnp.bfloat16
    keys = iter(jax.random.split(key, 5 + 4 * cfg["n_layer"]))

    enc_emb = nrm(next(keys), (cfg["n_enc_vocab"], D))      # f32 (embedding gather)
    params = {
        "enc_emb": enc_emb,
        "pos_emb": nrm(next(keys), (cfg["n_enc_seq"] + 1, D)),
        "seg_emb": nrm(next(keys), (cfg["n_seg_type"], D)),
        "layers": [],
    }
    for _ in range(cfg["n_layer"]):
        params["layers"].append({
            "wqkv": nrm(next(keys), (3, D, HD), bf16),      # fused W_Q|W_K|W_V
            "bqkv": jnp.zeros((3, 1, HD), jnp.float32),
            "wo": nrm(next(keys), (HD, D), bf16), "bo": jnp.zeros((D,), jnp.float32),
            "ln1_g": jnp.ones((D,), jnp.float32), "ln1_b": jnp.zeros((D,), jnp.float32),
            "w1": nrm(next(keys), (D, DFF), bf16), "b1": jnp.zeros((DFF,), jnp.float32),
            "w2": nrm(next(keys), (DFF, D), bf16), "b2": jnp.zeros((D,), jnp.float32),
            "ln2_g": jnp.ones((D,), jnp.float32), "ln2_b": jnp.zeros((D,), jnp.float32),
        })
    params["w_pool"] = nrm(next(keys), (D, D))              # pooler stays in plain JAX
    params["b_pool"] = jnp.zeros((D,), jnp.float32)
    params["w_cls"] = nrm(next(keys), (D, 2))               # projection_cls, no bias
    # Tied LM head (projection_lm.weight = enc_emb): one-time bf16, pre-transposed
    # copy with the vocab padded to a multiple of 256 (keeps LM-head tiles lane-
    # aligned at production vocab sizes; padded logits are sliced off).
    vocab_pad = ((cfg["n_enc_vocab"] + 255) // 256) * 256
    lm_w = jnp.zeros((D, vocab_pad), bf16)
    params["lm_head_w"] = lm_w.at[:, :cfg["n_enc_vocab"]].set(enc_emb.T.astype(bf16))
    return params


# ----------------------------------------------------------------------------
# BERTPretrain forward
# ----------------------------------------------------------------------------
def bert_pretrain_forward(params, cfg, inputs, segments, return_probs=True):
    B, S = inputs.shape
    D, H, Dh = cfg["d_hidn"], cfg["n_head"], cfg["d_head"]
    HD = H * Dh
    eps = cfg["layer_norm_epsilon"]

    # positions: arange(S)+1 with pads forced to 0 (embedding gathers = glue)
    pad = inputs == cfg["i_pad"]
    positions = jnp.broadcast_to(jnp.arange(1, S + 1, dtype=jnp.int32)[None, :], (B, S))
    positions = jnp.where(pad, 0, positions)

    x = (params["enc_emb"][inputs]
         + params["pos_emb"][positions]
         + params["seg_emb"][segments]).astype(jnp.float32)          # (B, S, D)

    # Additive key-pad bias (B, 1, S): -1e9 where key is pad, broadcast over queries.
    attn_bias = jnp.where(pad, -1.0e9, 0.0).astype(jnp.float32).reshape(B, 1, S)
    scale = 1.0 / (D ** 0.5)   # reference scales by 1/sqrt(d_hidn) (intentional)

    attn_probs = []
    x2 = x.reshape(B * S, D)                                         # f32 residual stream
    for lp in params["layers"]:
        qkv3 = qkv_linear(x2, lp["wqkv"], lp["bqkv"])                # (3, B*S, HD) bf16
        ctx, prob = attention(qkv3.reshape(3, B, S, HD), attn_bias,
                              n_head=H, d_head=Dh, scale=scale,
                              return_probs=return_probs)
        if return_probs:
            attn_probs.append(prob)

        # wo projection fused with residual-add + LayerNorm1
        h1 = linear_add_ln(ctx.reshape(B * S, HD), lp["wo"], lp["bo"],
                           x2, lp["ln1_g"], lp["ln1_b"], eps)
        # FFN: conv1 (1x1) + GELU in bf16, conv2 fused with residual-add + LayerNorm2
        ff = linear(h1, lp["w1"], lp["b1"], act="gelu", out_dtype=jnp.bfloat16)
        x2 = linear_add_ln(ff, lp["w2"], lp["b2"],
                           h1, lp["ln2_g"], lp["ln2_b"], eps)

    outputs = x2.reshape(B, S, D)                                    # (B, S, D) f32
    # Pooler + (B,2) cls head: tiny, launch-overhead dominated -> plain JAX.
    cls = jnp.tanh(outputs[:, 0] @ params["w_pool"] + params["b_pool"])
    logits_cls = cls @ params["w_cls"]                               # (B, 2)
    # Tied LM head: bf16 pre-transposed weights, large tm for weight reuse.
    logits_lm = linear(x2, params["lm_head_w"], None,
                       tm_cap=1024, tn_cap=512, tk_cap=1024)
    logits_lm = logits_lm[:, :cfg["n_enc_vocab"]].reshape(B, S, cfg["n_enc_vocab"])
    return logits_cls, logits_lm, attn_probs


# ----------------------------------------------------------------------------
# Main
# ----------------------------------------------------------------------------
if __name__ == "__main__":
    cfg = dict(
        n_enc_vocab=64, n_enc_seq=8, n_seg_type=2, n_layer=2,
        d_hidn=32, n_head=4, d_head=8, d_ff=64,
        dropout=0.0, layer_norm_epsilon=1e-12, i_pad=0,
    )
    B, S = 2, cfg["n_enc_seq"]

    key = jax.random.PRNGKey(0)
    k_in, k_seg, k_par = jax.random.split(key, 3)

    inputs = jax.random.randint(k_in, (B, S), 1, cfg["n_enc_vocab"], dtype=jnp.int32)
    inputs = inputs.at[1, S - 2:].set(cfg["i_pad"])  # some pad tokens
    segments = jax.random.randint(k_seg, (B, S), 0, cfg["n_seg_type"], dtype=jnp.int32)

    params = init_params(k_par, cfg)

    @jax.jit
    def fwd(p, inp, seg):
        return bert_pretrain_forward(p, cfg, inp, seg, return_probs=True)

    logits_cls, logits_lm, attn_probs = fwd(params, inputs, segments)
    jax.block_until_ready((logits_cls, logits_lm, attn_probs))

    assert logits_cls.shape == (B, 2)
    assert logits_lm.shape == (B, S, cfg["n_enc_vocab"])
    assert len(attn_probs) == cfg["n_layer"]
    assert attn_probs[0].shape == (B, cfg["n_head"], S, S)
    assert bool(jnp.all(jnp.isfinite(logits_lm)))
    assert bool(jnp.all(jnp.isfinite(logits_cls)))
    print("KERNEL_OK")
</pallas_src>

<mosaic_0001>
module attributes {stable_mosaic.version = 11 : i64} {
  func.func @_matmul_kernel(%arg0: i32, %arg1: i32, %arg2: i32, %arg3: memref<16x32xf32, #tpu.memory_space<vmem>>, %arg4: memref<1x32x32xbf16, #tpu.memory_space<vmem>>, %arg5: memref<1x1x32xf32, #tpu.memory_space<vmem>>, %arg6: memref<1x16x32xbf16, #tpu.memory_space<vmem>>, %arg7: memref<16x32xf32, #tpu.memory_space<vmem>>) attributes {dimension_semantics = [#tpu.dimension_semantics<parallel>, #tpu.dimension_semantics<parallel>, #tpu.dimension_semantics<arbitrary>], iteration_bounds = array<i64: 3, 1, 1>, scalar_prefetch = 0 : i64, scratch_operands = 1 : i64, tpu.core_type = #tpu.core_type<tc>, window_params = [{transform_indices = @transform_0, window_bounds = array<i64: 16, 32>}, {transform_indices = @transform_1, window_bounds = array<i64: 1, 32, 32>}, {transform_indices = @transform_2, window_bounds = array<i64: 1, 1, 32>}, {transform_indices = @transform_3, window_bounds = array<i64: 1, 16, 32>}]} {
    %c0_i32 = arith.constant 0 : i32
    %0 = arith.cmpi eq, %arg2, %c0_i32 : i32
    %1 = arith.extui %0 : i1 to i32
    %c0_i32_0 = arith.constant 0 : i32
    %2 = arith.cmpi ne, %1, %c0_i32_0 : i32
    scf.if %2 {
      %cst_11 = arith.constant 0.000000e+00 : f32
      %14 = vector.broadcast %cst_11 : f32 to vector<16x32xf32>
      %c0_12 = arith.constant 0 : index
      %c0_13 = arith.constant 0 : index
      %15 = vector.load %arg7[%c0_12, %c0_13] : memref<16x32xf32, #tpu.memory_space<vmem>>, vector<16x32xf32>
      tpu.vector_store %arg7[%c0_12, %c0_13], %14 {strides = array<i32>} : memref<16x32xf32, #tpu.memory_space<vmem>>, vector<16x32xf32>,
    } else {
    }
    %c0 = arith.constant 0 : index
    %c0_1 = arith.constant 0 : index
    %3 = vector.load %arg3[%c0, %c0_1] : memref<16x32xf32, #tpu.memory_space<vmem>>, vector<16x32xf32>
    %4 = arith.truncf %3 : vector<16x32xf32> to vector<16x32xbf16>
    %c0_2 = arith.constant 0 : index
    %c0_3 = arith.constant 0 : index
    %c0_4 = arith.constant 0 : index
    %5 = vector.load %arg4[%c0_2, %c0_3, %c0_4] : memref<1x32x32xbf16, #tpu.memory_space<vmem>>, vector<1x32x32xbf16>
    %6 = vector.shape_cast %5 : vector<1x32x32xbf16> to vector<32x32xbf16>
    %c0_5 = arith.constant 0 : index
    %c0_6 = arith.constant 0 : index
    %7 = vector.load %arg7[%c0_5, %c0_6] : memref<16x32xf32, #tpu.memory_space<vmem>>, vector<16x32xf32>
    %cst = arith.constant dense<0.000000e+00> : vector<16x32xf32>
    %8 = tpu.matmul %4, %6, %cst {dimension_numbers = #tpu.dot_dimension_numbers<[1], [0], [0], [1], [0, 0, 1, 1], [], []>} : vector<16x32xbf16>, vector<32x32xbf16>, vector<16x32xf32> -> vector<16x32xf32>
    %9 = arith.addf %7, %8 : vector<16x32xf32>
    %c0_7 = arith.constant 0 : index
    %c0_8 = arith.constant 0 : index
    %10 = vector.load %arg7[%c0_7, %c0_8] : memref<16x32xf32, #tpu.memory_space<vmem>>, vector<16x32xf32>
    tpu.vector_store %arg7[%c0_7, %c0_8], %9 {strides = array<i32>} : memref<16x32xf32, #tpu.memory_space<vmem>>, vector<16x32xf32>,
    %c0_i32_9 = arith.constant 0 : i32
    %11 = arith.cmpi eq, %arg2, %c0_i32_9 : i32
    %12 = arith.extui %11 : i1 to i32
    %c0_i32_10 = arith.constant 0 : i32
    %13 = arith.cmpi ne, %12, %c0_i32_10 : i32
    scf.if %13 {
      %c0_11 = arith.constant 0 : index
      %c0_12 = arith.constant 0 : index
      %14 = vector.load %arg7[%c0_11, %c0_12] : memref<16x32xf32, #tpu.memory_space<vmem>>, vector<16x32xf32>
      %c0_13 = arith.constant 0 : index
      %c0_14 = arith.constant 0 : index
      %c0_15 = arith.constant 0 : index
      %15 = vector.load %arg5[%c0_13, %c0_14, %c0_15] : memref<1x1x32xf32, #tpu.memory_space<vmem>>, vector<1x1x32xf32>
      %16 = vector.shape_cast %15 : vector<1x1x32xf32> to vector<1x32xf32>
      %17 = vector.broadcast %16 : vector<1x32xf32> to vector<16x32xf32>
      %18 = arith.addf %14, %17 : vector<16x32xf32>
      %19 = arith.truncf %18 : vector<16x32xf32> to vector<16x32xbf16>
      %c0_16 = arith.constant 0 : index
      %c0_17 = arith.constant 0 : index
      %c0_18 = arith.constant 0 : index
      %20 = vector.load %arg6[%c0_16, %c0_17, %c0_18] : memref<1x16x32xbf16, #tpu.memory_space<vmem>>, vector<1x16x32xbf16>
      %21 = vector.shape_cast %20 : vector<1x16x32xbf16> to vector<16x32xbf16>
      %22 = vector.shape_cast %19 : vector<16x32xbf16> to vector<1x16x32xbf16>
      tpu.vector_store %arg6[%c0_16, %c0_17, %c0_18], %22 {strides = array<i32>} : memref<1x16x32xbf16, #tpu.memory_space<vmem>>, vector<1x16x32xbf16>,
    } else {
    }
    return
  }
  func.func @transform_0(%arg0: i32, %arg1: i32, %arg2: i32) -> (i32, i32) {
    %c0_i32 = arith.constant 0 : i32
    return %arg1, %arg2 : i32, i32
  }
  func.func @transform_1(%arg0: i32, %arg1: i32, %arg2: i32) -> (i32, i32, i32) {
    %c0_i32 = arith.constant 0 : i32
    %c0_i32_0 = arith.constant 0 : i32
    return %arg0, %arg2, %c0_i32 : i32, i32, i32
  }
  func.func @transform_2(%arg0: i32, %arg1: i32, %arg2: i32) -> (i32, i32, i32) {
    %c0_i32 = arith.constant 0 : i32
    %c0_i32_0 = arith.constant 0 : i32
    %c0_i32_1 = arith.constant 0 : i32
    return %arg0, %c0_i32, %c0_i32_0 : i32, i32, i32
  }
  func.func @transform_3(%arg0: i32, %arg1: i32, %arg2: i32) -> (i32, i32, i32) {
    %c0_i32 = arith.constant 0 : i32
    %c0_i32_0 = arith.constant 0 : i32
    return %arg0, %arg1, %c0_i32 : i32, i32, i32
  }
}

module attributes {stable_mosaic.version = 11 : i64} {
  func.func @_matmul_addln_kernel(%arg0: i32, %arg1: i32, %arg2: memref<16x32xbf16, #tpu.memory_space<vmem>>, %arg3: memref<32x32xbf16, #tpu.memory_space<vmem>>, %arg4: memref<1x32xf32, #tpu.memory_space<vmem>>, %arg5: memref<16x32xf32, #tpu.memory_space<vmem>>, %arg6: memref<1x32xf32, #tpu.memory_space<vmem>>, %arg7: memref<1x32xf32, #tpu.memory_space<vmem>>, %arg8: memref<16x32xf32, #tpu.memory_space<vmem>>, %arg9: memref<16x32xf32, #tpu.memory_space<vmem>>) attributes {dimension_semantics = [#tpu.dimension_semantics<parallel>, #tpu.dimension_semantics<arbitrary>], iteration_bounds = array<i64: 1, 1>, scalar_prefetch = 0 : i64, scratch_operands = 1 : i64, tpu.core_type = #tpu.core_type<tc>, window_params = [{transform_indices = @transform_0, window_bounds = array<i64: 16, 32>}, {transform_indices = @transform_1, window_bounds = array<i64: 32, 32>}, {pipeline_mode = #tpu.pipeline_mode<synchronous>, transform_indices = @transform_2, window_bounds = array<i64: 1, 32>}, {transform_indices = @transform_3, window_bounds = array<i64: 16, 32>}, {pipeline_mode = #tpu.pipeline_mode<synchronous>, transform_indices = @transform_4, window_bounds = array<i64: 1, 32>}, {pipeline_mode = #tpu.pipeline_mode<synchronous>, transform_indices = @transform_5, window_bounds = array<i64: 1, 32>}, {transform_indices = @transform_6, window_bounds = array<i64: 16, 32>}]} {
    %c0_i32 = arith.constant 0 : i32
    %0 = arith.cmpi eq, %arg1, %c0_i32 : i32
    %1 = arith.extui %0 : i1 to i32
    %c0_i32_0 = arith.constant 0 : i32
    %2 = arith.cmpi ne, %1, %c0_i32_0 : i32
    scf.if %2 {
      %cst_10 = arith.constant 0.000000e+00 : f32
      %12 = vector.broadcast %cst_10 : f32 to vector<16x32xf32>
      %c0_11 = arith.constant 0 : index
      %c0_12 = arith.constant 0 : index
      %13 = vector.load %arg9[%c0_11, %c0_12] : memref<16x32xf32, #tpu.memory_space<vmem>>, vector<16x32xf32>
      tpu.vector_store %arg9[%c0_11, %c0_12], %12 {strides = array<i32>} : memref<16x32xf32, #tpu.memory_space<vmem>>, vector<16x32xf32>,
    } else {
    }
    %c0 = arith.constant 0 : index
    %c0_1 = arith.constant 0 : index
    %3 = vector.load %arg2[%c0, %c0_1] : memref<16x32xbf16, #tpu.memory_space<vmem>>, vector<16x32xbf16>
    %c0_2 = arith.constant 0 : index
    %c0_3 = arith.constant 0 : index
    %4 = vector.load %arg3[%c0_2, %c0_3] : memref<32x32xbf16, #tpu.memory_space<vmem>>, vector<32x32xbf16>
    %c0_4 = arith.constant 0 : index
    %c0_5 = arith.constant 0 : index
    %5 = vector.load %arg9[%c0_4, %c0_5] : memref<16x32xf32, #tpu.memory_space<vmem>>, vector<16x32xf32>
    %cst = arith.constant dense<0.000000e+00> : vector<16x32xf32>
    %6 = tpu.matmul %3, %4, %cst {dimension_numbers = #tpu.dot_dimension_numbers<[1], [0], [0], [1], [0, 0, 1, 1], [], []>} : vector<16x32xbf16>, vector<32x32xbf16>, vector<16x32xf32> -> vector<16x32xf32>
    %7 = arith.addf %5, %6 : vector<16x32xf32>
    %c0_6 = arith.constant 0 : index
    %c0_7 = arith.constant 0 : index
    %8 = vector.load %arg9[%c0_6, %c0_7] : memref<16x32xf32, #tpu.memory_space<vmem>>, vector<16x32xf32>
    tpu.vector_store %arg9[%c0_6, %c0_7], %7 {strides = array<i32>} : memref<16x32xf32, #tpu.memory_space<vmem>>, vector<16x32xf32>,
    %c0_i32_8 = arith.constant 0 : i32
    %9 = arith.cmpi eq, %arg1, %c0_i32_8 : i32
    %10 = arith.extui %9 : i1 to i32
    %c0_i32_9 = arith.constant 0 : i32
    %11 = arith.cmpi ne, %10, %c0_i32_9 : i32
    scf.if %11 {
      %c0_10 = arith.constant 0 : index
      %c0_11 = arith.constant 0 : index
      %12 = vector.load %arg9[%c0_10, %c0_11] : memref<16x32xf32, #tpu.memory_space<vmem>>, vector<16x32xf32>
      %c0_12 = arith.constant 0 : index
      %c0_13 = arith.constant 0 : index
      %13 = vector.load %arg4[%c0_12, %c0_13] : memref<1x32xf32, #tpu.memory_space<vmem>>, vector<1x32xf32>
      %14 = vector.broadcast %13 : vector<1x32xf32> to vector<16x32xf32>
      %15 = arith.addf %12, %14 : vector<16x32xf32>
      %c0_14 = arith.constant 0 : index
      %c0_15 = arith.constant 0 : index
      %16 = vector.load %arg5[%c0_14, %c0_15] : memref<16x32xf32, #tpu.memory_space<vmem>>, vector<16x32xf32>
      %17 = arith.addf %15, %16 : vector<16x32xf32>
      %cst_16 = arith.constant dense<0.000000e+00> : vector<16xf32>
      %18 = vector.multi_reduction <add>, %17, %cst_16 [1] : vector<16x32xf32> to vector<16xf32>
      %19 = vector.shape_cast %18 : vector<16xf32> to vector<16x1xf32>
      %cst_17 = arith.constant 3.200000e+01 : f32
      %20 = vector.broadcast %cst_17 : f32 to vector<16x1xf32>
      %21 = arith.divf %19, %20 : vector<16x1xf32>
      %22 = vector.broadcast %21 : vector<16x1xf32> to vector<16x32xf32>
      %23 = arith.subf %17, %22 : vector<16x32xf32>
      %24 = arith.mulf %23, %23 : vector<16x32xf32>
      %cst_18 = arith.constant dense<0.000000e+00> : vector<16xf32>
      %25 = vector.multi_reduction <add>, %24, %cst_18 [1] : vector<16x32xf32> to vector<16xf32>
      %26 = vector.shape_cast %25 : vector<16xf32> to vector<16x1xf32>
      %cst_19 = arith.constant 3.200000e+01 : f32
      %27 = vector.broadcast %cst_19 : f32 to vector<16x1xf32>
      %28 = arith.divf %26, %27 : vector<16x1xf32>
      %cst_20 = arith.constant 9.99999996E-13 : f32
      %29 = vector.broadcast %cst_20 : f32 to vector<16x1xf32>
      %30 = arith.addf %28, %29 : vector<16x1xf32>
      %31 = math.rsqrt %30 : vector<16x1xf32>
      %32 = vector.broadcast %31 : vector<16x1xf32> to vector<16x32xf32>
      %33 = arith.mulf %23, %32 : vector<16x32xf32>
      %c0_21 = arith.constant 0 : index
      %c0_22 = arith.constant 0 : index
      %34 = vector.load %arg6[%c0_21, %c0_22] : memref<1x32xf32, #tpu.memory_space<vmem>>, vector<1x32xf32>
      %35 = vector.broadcast %34 : vector<1x32xf32> to vector<16x32xf32>
      %36 = arith.mulf %33, %35 : vector<16x32xf32>
      %c0_23 = arith.constant 0 : index
      %c0_24 = arith.constant 0 : index
      %37 = vector.load %arg7[%c0_23, %c0_24] : memref<1x32xf32, #tpu.memory_space<vmem>>, vector<1x32xf32>
      %38 = vector.broadcast %37 : vector<1x32xf32> to vector<16x32xf32>
      %39 = arith.addf %36, %38 : vector<16x32xf32>
      %c0_25 = arith.constant 0 : index
      %c0_26 = arith.constant 0 : index
      %40 = vector.load %arg8[%c0_25, %c0_26] : memref<16x32xf32, #tpu.memory_space<vmem>>, vector<16x32xf32>
      tpu.vector_store %arg8[%c0_25, %c0_26], %39 {strides = array<i32>} : memref<16x32xf32, #tpu.memory_space<vmem>>, vector<16x32xf32>,
    } else {
    }
    return
  }
  func.func @transform_0(%arg0: i32, %arg1: i32) -> (i32, i32) {
    %c0_i32 = arith.constant 0 : i32
    return %arg0, %arg1 : i32, i32
  }
  func.func @transform_1(%arg0: i32, %arg1: i32) -> (i32, i32) {
    %c0_i32 = arith.constant 0 : i32
    %c0_i32_0 = arith.constant 0 : i32
    return %arg1, %c0_i32 : i32, i32
  }
  func.func @transform_2(%arg0: i32, %arg1: i32) -> (i32, i32) {
    %c0_i32 = arith.constant 0 : i32
    %c0_i32_0 = arith.constant 0 : i32
    %c0_i32_1 = arith.constant 0 : i32
    return %c0_i32, %c0_i32_0 : i32, i32
  }
  func.func @transform_3(%arg0: i32, %arg1: i32) -> (i32, i32) {
    %c0_i32 = arith.constant 0 : i32
    %c0_i32_0 = arith.constant 0 : i32
    return %arg0, %c0_i32 : i32, i32
  }
  func.func @transform_4(%arg0: i32, %arg1: i32) -> (i32, i32) {
    %c0_i32 = arith.constant 0 : i32
    %c0_i32_0 = arith.constant 0 : i32
    %c0_i32_1 = arith.constant 0 : i32
    return %c0_i32, %c0_i32_0 : i32, i32
  }
  func.func @transform_5(%arg0: i32, %arg1: i32) -> (i32, i32) {
    %c0_i32 = arith.constant 0 : i32
    %c0_i32_0 = arith.constant 0 : i32
    %c0_i32_1 = arith.constant 0 : i32
    return %c0_i32, %c0_i32_0 : i32, i32
  }
  func.func @transform_6(%arg0: i32, %arg1: i32) -> (i32, i32) {
    %c0_i32 = arith.constant 0 : i32
    %c0_i32_0 = arith.constant 0 : i32
    return %arg0, %c0_i32 : i32, i32
  }
}

module attributes {stable_mosaic.version = 11 : i64} {
  func.func @_matmul_kernel(%arg0: i32, %arg1: i32, %arg2: i32, %arg3: memref<16x32xf32, #tpu.memory_space<vmem>>, %arg4: memref<32x64xbf16, #tpu.memory_space<vmem>>, %arg5: memref<1x64xf32, #tpu.memory_space<vmem>>, %arg6: memref<16x64xbf16, #tpu.memory_space<vmem>>, %arg7: memref<16x64xf32, #tpu.memory_space<vmem>>) attributes {dimension_semantics = [#tpu.dimension_semantics<parallel>, #tpu.dimension_semantics<parallel>, #tpu.dimension_semantics<arbitrary>], iteration_bounds = array<i64: 1, 1, 1>, scalar_prefetch = 0 : i64, scratch_operands = 1 : i64, tpu.core_type = #tpu.core_type<tc>, window_params = [{transform_indices = @transform_0, window_bounds = array<i64: 16, 32>}, {transform_indices = @transform_1, window_bounds = array<i64: 32, 64>}, {transform_indices = @transform_2, window_bounds = array<i64: 1, 64>}, {transform_indices = @transform_3, window_bounds = array<i64: 16, 64>}]} {
    %c0_i32 = arith.constant 0 : i32
    %0 = arith.cmpi eq, %arg2, %c0_i32 : i32
    %1 = arith.extui %0 : i1 to i32
    %c0_i32_0 = arith.constant 0 : i32
    %2 = arith.cmpi ne, %1, %c0_i32_0 : i32
    scf.if %2 {
      %cst_10 = arith.constant 0.000000e+00 : f32
      %13 = vector.broadcast %cst_10 : f32 to vector<16x64xf32>
      %c0_11 = arith.constant 0 : index
      %c0_12 = arith.constant 0 : index
      %14 = vector.load %arg7[%c0_11, %c0_12] : memref<16x64xf32, #tpu.memory_space<vmem>>, vector<16x64xf32>
      tpu.vector_store %arg7[%c0_11, %c0_12], %13 {strides = array<i32>} : memref<16x64xf32, #tpu.memory_space<vmem>>, vector<16x64xf32>,
    } else {
    }
    %c0 = arith.constant 0 : index
    %c0_1 = arith.constant 0 : index
    %3 = vector.load %arg3[%c0, %c0_1] : memref<16x32xf32, #tpu.memory_space<vmem>>, vector<16x32xf32>
    %4 = arith.truncf %3 : vector<16x32xf32> to vector<16x32xbf16>
    %c0_2 = arith.constant 0 : index
    %c0_3 = arith.constant 0 : index
    %5 = vector.load %arg4[%c0_2, %c0_3] : memref<32x64xbf16, #tpu.memory_space<vmem>>, vector<32x64xbf16>
    %c0_4 = arith.constant 0 : index
    %c0_5 = arith.constant 0 : index
    %6 = vector.load %arg7[%c0_4, %c0_5] : memref<16x64xf32, #tpu.memory_space<vmem>>, vector<16x64xf32>
    %cst = arith.constant dense<0.000000e+00> : vector<16x64xf32>
    %7 = tpu.matmul %4, %5, %cst {dimension_numbers = #tpu.dot_dimension_numbers<[1], [0], [0], [1], [0, 0, 1, 1], [], []>} : vector<16x32xbf16>, vector<32x64xbf16>, vector<16x64xf32> -> vector<16x64xf32>
    %8 = arith.addf %6, %7 : vector<16x64xf32>
    %c0_6 = arith.constant 0 : index
    %c0_7 = arith.constant 0 : index
    %9 = vector.load %arg7[%c0_6, %c0_7] : memref<16x64xf32, #tpu.memory_space<vmem>>, vector<16x64xf32>
    tpu.vector_store %arg7[%c0_6, %c0_7], %8 {strides = array<i32>} : memref<16x64xf32, #tpu.memory_space<vmem>>, vector<16x64xf32>,
    %c0_i32_8 = arith.constant 0 : i32
    %10 = arith.cmpi eq, %arg2, %c0_i32_8 : i32
    %11 = arith.extui %10 : i1 to i32
    %c0_i32_9 = arith.constant 0 : i32
    %12 = arith.cmpi ne, %11, %c0_i32_9 : i32
    scf.if %12 {
      %c0_10 = arith.constant 0 : index
      %c0_11 = arith.constant 0 : index
      %13 = vector.load %arg7[%c0_10, %c0_11] : memref<16x64xf32, #tpu.memory_space<vmem>>, vector<16x64xf32>
      %c0_12 = arith.constant 0 : index
      %c0_13 = arith.constant 0 : index
      %14 = vector.load %arg5[%c0_12, %c0_13] : memref<1x64xf32, #tpu.memory_space<vmem>>, vector<1x64xf32>
      %15 = vector.broadcast %14 : vector<1x64xf32> to vector<16x64xf32>
      %16 = arith.addf %13, %15 : vector<16x64xf32>
      %cst_14 = arith.constant 5.000000e-01 : f32
      %17 = vector.broadcast %cst_14 : f32 to vector<16x64xf32>
      %18 = arith.mulf %17, %16 : vector<16x64xf32>
      %cst_15 = arith.constant 4.471500e-02 : f32
      %19 = vector.broadcast %cst_15 : f32 to vector<16x64xf32>
      %20 = arith.mulf %19, %16 : vector<16x64xf32>
      %21 = arith.mulf %20, %16 : vector<16x64xf32>
      %22 = arith.mulf %21, %16 : vector<16x64xf32>
      %23 = arith.addf %16, %22 : vector<16x64xf32>
      %cst_16 = arith.constant 0.797884583 : f32
      %24 = vector.broadcast %cst_16 : f32 to vector<16x64xf32>
      %25 = arith.mulf %24, %23 : vector<16x64xf32>
      %26 = math.tanh %25 : vector<16x64xf32>
      %cst_17 = arith.constant 1.000000e+00 : f32
      %27 = vector.broadcast %cst_17 : f32 to vector<16x64xf32>
      %28 = arith.addf %27, %26 : vector<16x64xf32>
      %29 = arith.mulf %18, %28 : vector<16x64xf32>
      %30 = arith.truncf %29 : vector<16x64xf32> to vector<16x64xbf16>
      %c0_18 = arith.constant 0 : index
      %c0_19 = arith.constant 0 : index
      %31 = vector.load %arg6[%c0_18, %c0_19] : memref<16x64xbf16, #tpu.memory_space<vmem>>, vector<16x64xbf16>
      tpu.vector_store %arg6[%c0_18, %c0_19], %30 {strides = array<i32>} : memref<16x64xbf16, #tpu.memory_space<vmem>>, vector<16x64xbf16>,
    } else {
    }
    return
  }
  func.func @transform_0(%arg0: i32, %arg1: i32, %arg2: i32) -> (i32, i32) {
    %c0_i32 = arith.constant 0 : i32
    return %arg0, %arg2 : i32, i32
  }
  func.func @transform_1(%arg0: i32, %arg1: i32, %arg2: i32) -> (i32, i32) {
    %c0_i32 = arith.constant 0 : i32
    return %arg2, %arg1 : i32, i32
  }
  func.func @transform_2(%arg0: i32, %arg1: i32, %arg2: i32) -> (i32, i32) {
    %c0_i32 = arith.constant 0 : i32
    %c0_i32_0 = arith.constant 0 : i32
    return %c0_i32, %arg1 : i32, i32
  }
  func.func @transform_3(%arg0: i32, %arg1: i32, %arg2: i32) -> (i32, i32) {
    %c0_i32 = arith.constant 0 : i32
    return %arg0, %arg1 : i32, i32
  }
}

module attributes {stable_mosaic.version = 11 : i64} {
  func.func @_attention_kernel(%arg0: i32, %arg1: i32, %arg2: memref<1x1x8x32xbf16, #tpu.memory_space<vmem>>, %arg3: memref<1x1x8x32xbf16, #tpu.memory_space<vmem>>, %arg4: memref<1x1x8x32xbf16, #tpu.memory_space<vmem>>, %arg5: memref<1x1x8xf32, #tpu.memory_space<vmem>>, %arg6: memref<1x8x32xbf16, #tpu.memory_space<vmem>>, %arg7: memref<1x4x8x8xf32, #tpu.memory_space<vmem>>) attributes {dimension_semantics = [#tpu.dimension_semantics<parallel>, #tpu.dimension_semantics<parallel>], iteration_bounds = array<i64: 2, 1>, scalar_prefetch = 0 : i64, scratch_operands = 0 : i64, tpu.core_type = #tpu.core_type<tc>, window_params = [{transform_indices = @transform_0, window_bounds = array<i64: 1, 1, 8, 32>}, {transform_indices = @transform_1, window_bounds = array<i64: 1, 1, 8, 32>}, {transform_indices = @transform_2, window_bounds = array<i64: 1, 1, 8, 32>}, {transform_indices = @transform_3, window_bounds = array<i64: 1, 1, 8>}, {transform_indices = @transform_4, window_bounds = array<i64: 1, 8, 32>}, {transform_indices = @transform_5, window_bounds = array<i64: 1, 4, 8, 8>}]} {
    %c0 = arith.constant 0 : index
    %c0_0 = arith.constant 0 : index
    %c0_1 = arith.constant 0 : index
    %0 = vector.load %arg5[%c0, %c0_0, %c0_1] : memref<1x1x8xf32, #tpu.memory_space<vmem>>, vector<1x1x8xf32>
    %1 = vector.shape_cast %0 : vector<1x1x8xf32> to vector<1x8xf32>
    %c0_2 = arith.constant 0 : index
    %c0_3 = arith.constant 0 : index
    %c0_4 = arith.constant 0 : index
    %c0_5 = arith.constant 0 : index
    %2 = vector.load %arg2[%c0_2, %c0_3, %c0_4, %c0_5] : memref<1x1x8x32xbf16, #tpu.memory_space<vmem>>, vector<1x1x8x8xbf16>
    %3 = vector.shape_cast %2 : vector<1x1x8x8xbf16> to vector<8x8xbf16>
    %c0_6 = arith.constant 0 : index
    %c0_7 = arith.constant 0 : index
    %c0_8 = arith.constant 0 : index
    %c0_9 = arith.constant 0 : index
    %4 = vector.load %arg3[%c0_6, %c0_7, %c0_8, %c0_9] : memref<1x1x8x32xbf16, #tpu.memory_space<vmem>>, vector<1x1x8x8xbf16>
    %5 = vector.shape_cast %4 : vector<1x1x8x8xbf16> to vector<8x8xbf16>
    %c0_10 = arith.constant 0 : index
    %c0_11 = arith.constant 0 : index
    %c0_12 = arith.constant 0 : index
    %c0_13 = arith.constant 0 : index
    %6 = vector.load %arg4[%c0_10, %c0_11, %c0_12, %c0_13] : memref<1x1x8x32xbf16, #tpu.memory_space<vmem>>, vector<1x1x8x8xbf16>
    %7 = vector.shape_cast %6 : vector<1x1x8x8xbf16> to vector<8x8xbf16>
    %cst = arith.constant dense<0.000000e+00> : vector<8x8xf32>
    %8 = tpu.matmul %3, %5, %cst {dimension_numbers = #tpu.dot_dimension_numbers<[1], [1], [0], [0], [0, 0, 1, 0], [], []>} : vector<8x8xbf16>, vector<8x8xbf16>, vector<8x8xf32> -> vector<8x8xf32>
    %cst_14 = arith.constant 0.176776692 : f32
    %9 = vector.broadcast %cst_14 : f32 to vector<8x8xf32>
    %10 = arith.mulf %8, %9 : vector<8x8xf32>
    %11 = vector.broadcast %1 : vector<1x8xf32> to vector<8x8xf32>
    %12 = arith.addf %10, %11 : vector<8x8xf32>
    %cst_15 = arith.constant dense<0xFF800000> : vector<8xf32>
    %13 = vector.multi_reduction <maximumf>, %12, %cst_15 [1] : vector<8x8xf32> to vector<8xf32>
    %14 = vector.shape_cast %13 : vector<8xf32> to vector<8x1xf32>
    %15 = vector.broadcast %14 : vector<8x1xf32> to vector<8x8xf32>
    %16 = arith.subf %12, %15 : vector<8x8xf32>
    %17 = math.exp %16 : vector<8x8xf32>
    %cst_16 = arith.constant dense<0.000000e+00> : vector<8xf32>
    %18 = vector.multi_reduction <add>, %17, %cst_16 [1] : vector<8x8xf32> to vector<8xf32>
    %19 = vector.shape_cast %18 : vector<8xf32> to vector<8x1xf32>
    %20 = tpu.reciprocal %19 {approx = true} : vector<8x1xf32> -> vector<8x1xf32>
    %21 = vector.broadcast %20 : vector<8x1xf32> to vector<8x8xf32>
    %22 = arith.mulf %17, %21 : vector<8x8xf32>
    %c0_17 = arith.constant 0 : index
    %c0_18 = arith.constant 0 : index
    %c0_19 = arith.constant 0 : index
    %c0_20 = arith.constant 0 : index
    %23 = vector.load %arg7[%c0_17, %c0_18, %c0_19, %c0_20] : memref<1x4x8x8xf32, #tpu.memory_space<vmem>>, vector<1x1x8x8xf32>
    %24 = vector.shape_cast %23 : vector<1x1x8x8xf32> to vector<8x8xf32>
    %25 = vector.shape_cast %22 : vector<8x8xf32> to vector<1x1x8x8xf32>
    tpu.vector_store %arg7[%c0_17, %c0_18, %c0_19, %c0_20], %25 {strides = array<i32>} : memref<1x4x8x8xf32, #tpu.memory_space<vmem>>, vector<1x1x8x8xf32>,
    %26 = arith.truncf %22 : vector<8x8xf32> to vector<8x8xbf16>
    %cst_21 = arith.constant dense<0.000000e+00> : vector<8x8xf32>
    %27 = tpu.matmul %26, %7, %cst_21 {dimension_numbers = #tpu.dot_dimension_numbers<[1], [0], [0], [1], [0, 0, 1, 1], [], []>} : vector<8x8xbf16>, vector<8x8xbf16>, vector<8x8xf32> -> vector<8x8xf32>
    %28 = arith.truncf %27 : vector<8x8xf32> to vector<8x8xbf16>
    %c0_22 = arith.constant 0 : index
    %c0_23 = arith.constant 0 : index
    %c0_24 = arith.constant 0 : index
    %29 = vector.load %arg6[%c0_22, %c0_23, %c0_24] : memref<1x8x32xbf16, #tpu.memory_space<vmem>>, vector<1x8x8xbf16>
    %30 = vector.shape_cast %29 : vector<1x8x8xbf16> to vector<8x8xbf16>
    %31 = vector.shape_cast %28 : vector<8x8xbf16> to vector<1x8x8xbf16>
    tpu.vector_store %arg6[%c0_22, %c0_23, %c0_24], %31 {strides = array<i32>} : memref<1x8x32xbf16, #tpu.memory_space<vmem>>, vector<1x8x8xbf16>,
    %c0_25 = arith.constant 0 : index
    %c0_26 = arith.constant 0 : index
    %c0_27 = arith.constant 0 : index
    %c8 = arith.constant 8 : index
    %32 = vector.load %arg2[%c0_25, %c0_26, %c0_27, %c8] : memref<1x1x8x32xbf16, #tpu.memory_space<vmem>>, vector<1x1x8x8xbf16>
    %33 = vector.shape_cast %32 : vector<1x1x8x8xbf16> to vector<8x8xbf16>
    %c0_28 = arith.constant 0 : index
    %c0_29 = arith.constant 0 : index
    %c0_30 = arith.constant 0 : index
    %c8_31 = arith.constant 8 : index
    %34 = vector.load %arg3[%c0_28, %c0_29, %c0_30, %c8_31] : memref<1x1x8x32xbf16, #tpu.memory_space<vmem>>, vector<1x1x8x8xbf16>
    %35 = vector.shape_cast %34 : vector<1x1x8x8xbf16> to vector<8x8xbf16>
    %c0_32 = arith.constant 0 : index
    %c0_33 = arith.constant 0 : index
    %c0_34 = arith.constant 0 : index
    %c8_35 = arith.constant 8 : index
    %36 = vector.load %arg4[%c0_32, %c0_33, %c0_34, %c8_35] : memref<1x1x8x32xbf16, #tpu.memory_space<vmem>>, vector<1x1x8x8xbf16>
    %37 = vector.shape_cast %36 : vector<1x1x8x8xbf16> to vector<8x8xbf16>
    %cst_36 = arith.constant dense<0.000000e+00> : vector<8x8xf32>
    %38 = tpu.matmul %33, %35, %cst_36 {dimension_numbers = #tpu.dot_dimension_numbers<[1], [1], [0], [0], [0, 0, 1, 0], [], []>} : vector<8x8xbf16>, vector<8x8xbf16>, vector<8x8xf32> -> vector<8x8xf32>
    %cst_37 = arith.constant 0.176776692 : f32
    %39 = vector.broadcast %cst_37 : f32 to vector<8x8xf32>
    %40 = arith.mulf %38, %39 : vector<8x8xf32>
    %41 = vector.broadcast %1 : vector<1x8xf32> to vector<8x8xf32>
    %42 = arith.addf %40, %41 : vector<8x8xf32>
    %cst_38 = arith.constant dense<0xFF800000> : vector<8xf32>
    %43 = vector.multi_reduction <maximumf>, %42, %cst_38 [1] : vector<8x8xf32> to vector<8xf32>
    %44 = vector.shape_cast %43 : vector<8xf32> to vector<8x1xf32>
    %45 = vector.broadcast %44 : vector<8x1xf32> to vector<8x8xf32>
    %46 = arith.subf %42, %45 : vector<8x8xf32>
    %47 = math.exp %46 : vector<8x8xf32>
    %cst_39 = arith.constant dense<0.000000e+00> : vector<8xf32>
    %48 = vector.multi_reduction <add>, %47, %cst_39 [1] : vector<8x8xf32> to vector<8xf32>
    %49 = vector.shape_cast %48 : vector<8xf32> to vector<8x1xf32>
    %50 = tpu.reciprocal %49 {approx = true} : vector<8x1xf32> -> vector<8x1xf32>
    %51 = vector.broadcast %50 : vector<8x1xf32> to vector<8x8xf32>
    %52 = arith.mulf %47, %51 : vector<8x8xf32>
    %c0_40 = arith.constant 0 : index
    %c1 = arith.constant 1 : index
    %c0_41 = arith.constant 0 : index
    %c0_42 = arith.constant 0 : index
    %53 = vector.load %arg7[%c0_40, %c1, %c0_41, %c0_42] : memref<1x4x8x8xf32, #tpu.memory_space<vmem>>, vector<1x1x8x8xf32>
    %54 = vector.shape_cast %53 : vector<1x1x8x8xf32> to vector<8x8xf32>
    %55 = vector.shape_cast %52 : vector<8x8xf32> to vector<1x1x8x8xf32>
    tpu.vector_store %arg7[%c0_40, %c1, %c0_41, %c0_42], %55 {strides = array<i32>} : memref<1x4x8x8xf32, #tpu.memory_space<vmem>>, vector<1x1x8x8xf32>,
    %56 = arith.truncf %52 : vector<8x8xf32> to vector<8x8xbf16>
    %cst_43 = arith.constant dense<0.000000e+00> : vector<8x8xf32>
    %57 = tpu.matmul %56, %37, %cst_43 {dimension_numbers = #tpu.dot_dimension_numbers<[1], [0], [0], [1], [0, 0, 1, 1], [], []>} : vector<8x8xbf16>, vector<8x8xbf16>, vector<8x8xf32> -> vector<8x8xf32>
    %58 = arith.truncf %57 : vector<8x8xf32> to vector<8x8xbf16>
    %c0_44 = arith.constant 0 : index
    %c0_45 = arith.constant 0 : index
    %c8_46 = arith.constant 8 : index
    %59 = vector.load %arg6[%c0_44, %c0_45, %c8_46] : memref<1x8x32xbf16, #tpu.memory_space<vmem>>, vector<1x8x8xbf16>
    %60 = vector.shape_cast %59 : vector<1x8x8xbf16> to vector<8x8xbf16>
    %61 = vector.shape_cast %58 : vector<8x8xbf16> to vector<1x8x8xbf16>
    tpu.vector_store %arg6[%c0_44, %c0_45, %c8_46], %61 {strides = array<i32>} : memref<1x8x32xbf16, #tpu.memory_space<vmem>>, vector<1x8x8xbf16>,
    %c0_47 = arith.constant 0 : index
    %c0_48 = arith.constant 0 : index
    %c0_49 = arith.constant 0 : index
    %c16 = arith.constant 16 : index
    %62 = vector.load %arg2[%c0_47, %c0_48, %c0_49, %c16] : memref<1x1x8x32xbf16, #tpu.memory_space<vmem>>, vector<1x1x8x8xbf16>
    %63 = vector.shape_cast %62 : vector<1x1x8x8xbf16> to vector<8x8xbf16>
    %c0_50 = arith.constant 0 : index
    %c0_51 = arith.constant 0 : index
    %c0_52 = arith.constant 0 : index
    %c16_53 = arith.constant 16 : index
    %64 = vector.load %arg3[%c0_50, %c0_51, %c0_52, %c16_53] : memref<1x1x8x32xbf16, #tpu.memory_space<vmem>>, vector<1x1x8x8xbf16>
    %65 = vector.shape_cast %64 : vector<1x1x8x8xbf16> to vector<8x8xbf16>
    %c0_54 = arith.constant 0 : index
    %c0_55 = arith.constant 0 : index
    %c0_56 = arith.constant 0 : index
    %c16_57 = arith.constant 16 : index
    %66 = vector.load %arg4[%c0_54, %c0_55, %c0_56, %c16_57] : memref<1x1x8x32xbf16, #tpu.memory_space<vmem>>, vector<1x1x8x8xbf16>
    %67 = vector.shape_cast %66 : vector<1x1x8x8xbf16> to vector<8x8xbf16>
    %cst_58 = arith.constant dense<0.000000e+00> : vector<8x8xf32>
    %68 = tpu.matmul %63, %65, %cst_58 {dimension_numbers = #tpu.dot_dimension_numbers<[1], [1], [0], [0], [0, 0, 1, 0], [], []>} : vector<8x8xbf16>, vector<8x8xbf16>, vector<8x8xf32> -> vector<8x8xf32>
    %cst_59 = arith.constant 0.176776692 : f32
    %69 = vector.broadcast %cst_59 : f32 to vector<8x8xf32>
    %70 = arith.mulf %68, %69 : vector<8x8xf32>
    %71 = vector.broadcast %1 : vector<1x8xf32> to vector<8x8xf32>
    %72 = arith.addf %70, %71 : vector<8x8xf32>
    %cst_60 = arith.constant dense<0xFF800000> : vector<8xf32>
    %73 = vector.multi_reduction <maximumf>, %72, %cst_60 [1] : vector<8x8xf32> to vector<8xf32>
    %74 = vector.shape_cast %73 : vector<8xf32> to vector<8x1xf32>
    %75 = vector.broadcast %74 : vector<8x1xf32> to vector<8x8xf32>
    %76 = arith.subf %72, %75 : vector<8x8xf32>
    %77 = math.exp %76 : vector<8x8xf32>
    %cst_61 = arith.constant dense<0.000000e+00> : vector<8xf32>
    %78 = vector.multi_reduction <add>, %77, %cst_61 [1] : vector<8x8xf32> to vector<8xf32>
    %79 = vector.shape_cast %78 : vector<8xf32> to vector<8x1xf32>
    %80 = tpu.reciprocal %79 {approx = true} : vector<8x1xf32> -> vector<8x1xf32>
    %81 = vector.broadcast %80 : vector<8x1xf32> to vector<8x8xf32>
    %82 = arith.mulf %77, %81 : vector<8x8xf32>
    %c0_62 = arith.constant 0 : index
    %c2 = arith.constant 2 : index
    %c0_63 = arith.constant 0 : index
    %c0_64 = arith.constant 0 : index
    %83 = vector.load %arg7[%c0_62, %c2, %c0_63, %c0_64] : memref<1x4x8x8xf32, #tpu.memory_space<vmem>>, vector<1x1x8x8xf32>
    %84 = vector.shape_cast %83 : vector<1x1x8x8xf32> to vector<8x8xf32>
    %85 = vector.shape_cast %82 : vector<8x8xf32> to vector<1x1x8x8xf32>
    tpu.vector_store %arg7[%c0_62, %c2, %c0_63, %c0_64], %85 {strides = array<i32>} : memref<1x4x8x8xf32, #tpu.memory_space<vmem>>, vector<1x1x8x8xf32>,
    %86 = arith.truncf %82 : vector<8x8xf32> to vector<8x8xbf16>
    %cst_65 = arith.constant dense<0.000000e+00> : vector<8x8xf32>
    %87 = tpu.matmul %86, %67, %cst_65 {dimension_numbers = #tpu.dot_dimension_numbers<[1], [0], [0], [1], [0, 0, 1, 1], [], []>} : vector<8x8xbf16>, vector<8x8xbf16>, vector<8x8xf32> -> vector<8x8xf32>
    %88 = arith.truncf %87 : vector<8x8xf32> to vector<8x8xbf16>
    %c0_66 = arith.constant 0 : index
    %c0_67 = arith.constant 0 : index
    %c16_68 = arith.constant 16 : index
    %89 = vector.load %arg6[%c0_66, %c0_67, %c16_68] : memref<1x8x32xbf16, #tpu.memory_space<vmem>>, vector<1x8x8xbf16>
    %90 = vector.shape_cast %89 : vector<1x8x8xbf16> to vector<8x8xbf16>
    %91 = vector.shape_cast %88 : vector<8x8xbf16> to vector<1x8x8xbf16>
    tpu.vector_store %arg6[%c0_66, %c0_67, %c16_68], %91 {strides = array<i32>} : memref<1x8x32xbf16, #tpu.memory_space<vmem>>, vector<1x8x8xbf16>,
    %c0_69 = arith.constant 0 : index
    %c0_70 = arith.constant 0 : index
    %c0_71 = arith.constant 0 : index
    %c24 = arith.constant 24 : index
    %92 = vector.load %arg2[%c0_69, %c0_70, %c0_71, %c24] : memref<1x1x8x32xbf16, #tpu.memory_space<vmem>>, vector<1x1x8x8xbf16>
    %93 = vector.shape_cast %92 : vector<1x1x8x8xbf16> to vector<8x8xbf16>
    %c0_72 = arith.constant 0 : index
    %c0_73 = arith.constant 0 : index
    %c0_74 = arith.constant 0 : index
    %c24_75 = arith.constant 24 : index
    %94 = vector.load %arg3[%c0_72, %c0_73, %c0_74, %c24_75] : memref<1x1x8x32xbf16, #tpu.memory_space<vmem>>, vector<1x1x8x8xbf16>
    %95 = vector.shape_cast %94 : vector<1x1x8x8xbf16> to vector<8x8xbf16>
    %c0_76 = arith.constant 0 : index
    %c0_77 = arith.constant 0 : index
    %c0_78 = arith.constant 0 : index
    %c24_79 = arith.constant 24 : index
    %96 = vector.load %arg4[%c0_76, %c0_77, %c0_78, %c24_79] : memref<1x1x8x32xbf16, #tpu.memory_space<vmem>>, vector<1x1x8x8xbf16>
    %97 = vector.shape_cast %96 : vector<1x1x8x8xbf16> to vector<8x8xbf16>
    %cst_80 = arith.constant dense<0.000000e+00> : vector<8x8xf32>
    %98 = tpu.matmul %93, %95, %cst_80 {dimension_numbers = #tpu.dot_dimension_numbers<[1], [1], [0], [0], [0, 0, 1, 0], [], []>} : vector<8x8xbf16>, vector<8x8xbf16>, vector<8x8xf32> -> vector<8x8xf32>
    %cst_81 = arith.constant 0.176776692 : f32
    %99 = vector.broadcast %cst_81 : f32 to vector<8x8xf32>
    %100 = arith.mulf %98, %99 : vector<8x8xf32>
    %101 = vector.broadcast %1 : vector<1x8xf32> to vector<8x8xf32>
    %102 = arith.addf %100, %101 : vector<8x8xf32>
    %cst_82 = arith.constant dense<0xFF800000> : vector<8xf32>
    %103 = vector.multi_reduction <maximumf>, %102, %cst_82 [1] : vector<8x8xf32> to vector<8xf32>
    %104 = vector.shape_cast %103 : vector<8xf32> to vector<8x1xf32>
    %105 = vector.broadcast %104 : vector<8x1xf32> to vector<8x8xf32>
    %106 = arith.subf %102, %105 : vector<8x8xf32>
    %107 = math.exp %106 : vector<8x8xf32>
    %cst_83 = arith.constant dense<0.000000e+00> : vector<8xf32>
    %108 = vector.multi_reduction <add>, %107, %cst_83 [1] : vector<8x8xf32> to vector<8xf32>
    %109 = vector.shape_cast %108 : vector<8xf32> to vector<8x1xf32>
    %110 = tpu.reciprocal %109 {approx = true} : vector<8x1xf32> -> vector<8x1xf32>
    %111 = vector.broadcast %110 : vector<8x1xf32> to vector<8x8xf32>
    %112 = arith.mulf %107, %111 : vector<8x8xf32>
    %c0_84 = arith.constant 0 : index
    %c3 = arith.constant 3 : index
    %c0_85 = arith.constant 0 : index
    %c0_86 = arith.constant 0 : index
    %113 = vector.load %arg7[%c0_84, %c3, %c0_85, %c0_86] : memref<1x4x8x8xf32, #tpu.memory_space<vmem>>, vector<1x1x8x8xf32>
    %114 = vector.shape_cast %113 : vector<1x1x8x8xf32> to vector<8x8xf32>
    %115 = vector.shape_cast %112 : vector<8x8xf32> to vector<1x1x8x8xf32>
    tpu.vector_store %arg7[%c0_84, %c3, %c0_85, %c0_86], %115 {strides = array<i32>} : memref<1x4x8x8xf32, #tpu.memory_space<vmem>>, vector<1x1x8x8xf32>,
    %116 = arith.truncf %112 : vector<8x8xf32> to vector<8x8xbf16>
    %cst_87 = arith.constant dense<0.000000e+00> : vector<8x8xf32>
    %117 = tpu.matmul %116, %97, %cst_87 {dimension_numbers = #tpu.dot_dimension_numbers<[1], [0], [0], [1], [0, 0, 1, 1], [], []>} : vector<8x8xbf16>, vector<8x8xbf16>, vector<8x8xf32> -> vector<8x8xf32>
    %118 = arith.truncf %117 : vector<8x8xf32> to vector<8x8xbf16>
    %c0_88 = arith.constant 0 : index
    %c0_89 = arith.constant 0 : index
    %c24_90 = arith.constant 24 : index
    %119 = vector.load %arg6[%c0_88, %c0_89, %c24_90] : memref<1x8x32xbf16, #tpu.memory_space<vmem>>, vector<1x8x8xbf16>
    %120 = vector.shape_cast %119 : vector<1x8x8xbf16> to vector<8x8xbf16>
    %121 = vector.shape_cast %118 : vector<8x8xbf16> to vector<1x8x8xbf16>
    tpu.vector_store %arg6[%c0_88, %c0_89, %c24_90], %121 {strides = array<i32>} : memref<1x8x32xbf16, #tpu.memory_space<vmem>>, vector<1x8x8xbf16>,
    return
  }
  func.func @transform_0(%arg0: i32, %arg1: i32) -> (i32, i32, i32, i32) {
    %c0_i32 = arith.constant 0 : i32
    %c0_i32_0 = arith.constant 0 : i32
    %c0_i32_1 = arith.constant 0 : i32
    return %c0_i32, %arg0, %c0_i32_0, %arg1 : i32, i32, i32, i32
  }
  func.func @transform_1(%arg0: i32, %arg1: i32) -> (i32, i32, i32, i32) {
    %c1_i32 = arith.constant 1 : i32
    %c0_i32 = arith.constant 0 : i32
    %c0_i32_0 = arith.constant 0 : i32
    return %c1_i32, %arg0, %c0_i32, %arg1 : i32, i32, i32, i32
  }
  func.func @transform_2(%arg0: i32, %arg1: i32) -> (i32, i32, i32, i32) {
    %c2_i32 = arith.constant 2 : i32
    %c0_i32 = arith.constant 0 : i32
    %c0_i32_0 = arith.constant 0 : i32
    return %c2_i32, %arg0, %c0_i32, %arg1 : i32, i32, i32, i32
  }
  func.func @transform_3(%arg0: i32, %arg1: i32) -> (i32, i32, i32) {
    %c0_i32 = arith.constant 0 : i32
    %c0_i32_0 = arith.constant 0 : i32
    %c0_i32_1 = arith.constant 0 : i32
    return %arg0, %c0_i32, %c0_i32_0 : i32, i32, i32
  }
  func.func @transform_4(%arg0: i32, %arg1: i32) -> (i32, i32, i32) {
    %c0_i32 = arith.constant 0 : i32
    %c0_i32_0 = arith.constant 0 : i32
    return %arg0, %c0_i32, %arg1 : i32, i32, i32
  }
  func.func @transform_5(%arg0: i32, %arg1: i32) -> (i32, i32, i32, i32) {
    %c0_i32 = arith.constant 0 : i32
    %c0_i32_0 = arith.constant 0 : i32
    %c0_i32_1 = arith.constant 0 : i32
    return %arg0, %arg1, %c0_i32, %c0_i32_0 : i32, i32, i32, i32
  }
}

module attributes {stable_mosaic.version = 11 : i64} {
  func.func @_matmul_addln_kernel(%arg0: i32, %arg1: i32, %arg2: memref<16x64xbf16, #tpu.memory_space<vmem>>, %arg3: memref<64x32xbf16, #tpu.memory_space<vmem>>, %arg4: memref<1x32xf32, #tpu.memory_space<vmem>>, %arg5: memref<16x32xf32, #tpu.memory_space<vmem>>, %arg6: memref<1x32xf32, #tpu.memory_space<vmem>>, %arg7: memref<1x32xf32, #tpu.memory_space<vmem>>, %arg8: memref<16x32xf32, #tpu.memory_space<vmem>>, %arg9: memref<16x32xf32, #tpu.memory_space<vmem>>) attributes {dimension_semantics = [#tpu.dimension_semantics<parallel>, #tpu.dimension_semantics<arbitrary>], iteration_bounds = array<i64: 1, 1>, scalar_prefetch = 0 : i64, scratch_operands = 1 : i64, tpu.core_type = #tpu.core_type<tc>, window_params = [{transform_indices = @transform_0, window_bounds = array<i64: 16, 64>}, {transform_indices = @transform_1, window_bounds = array<i64: 64, 32>}, {pipeline_mode = #tpu.pipeline_mode<synchronous>, transform_indices = @transform_2, window_bounds = array<i64: 1, 32>}, {transform_indices = @transform_3, window_bounds = array<i64: 16, 32>}, {pipeline_mode = #tpu.pipeline_mode<synchronous>, transform_indices = @transform_4, window_bounds = array<i64: 1, 32>}, {pipeline_mode = #tpu.pipeline_mode<synchronous>, transform_indices = @transform_5, window_bounds = array<i64: 1, 32>}, {transform_indices = @transform_6, window_bounds = array<i64: 16, 32>}]} {
    %c0_i32 = arith.constant 0 : i32
    %0 = arith.cmpi eq, %arg1, %c0_i32 : i32
    %1 = arith.extui %0 : i1 to i32
    %c0_i32_0 = arith.constant 0 : i32
    %2 = arith.cmpi ne, %1, %c0_i32_0 : i32
    scf.if %2 {
      %cst_10 = arith.constant 0.000000e+00 : f32
      %12 = vector.broadcast %cst_10 : f32 to vector<16x32xf32>
      %c0_11 = arith.constant 0 : index
      %c0_12 = arith.constant 0 : index
      %13 = vector.load %arg9[%c0_11, %c0_12] : memref<16x32xf32, #tpu.memory_space<vmem>>, vector<16x32xf32>
      tpu.vector_store %arg9[%c0_11, %c0_12], %12 {strides = array<i32>} : memref<16x32xf32, #tpu.memory_space<vmem>>, vector<16x32xf32>,
    } else {
    }
    %c0 = arith.constant 0 : index
    %c0_1 = arith.constant 0 : index
    %3 = vector.load %arg2[%c0, %c0_1] : memref<16x64xbf16, #tpu.memory_space<vmem>>, vector<16x64xbf16>
    %c0_2 = arith.constant 0 : index
    %c0_3 = arith.constant 0 : index
    %4 = vector.load %arg3[%c0_2, %c0_3] : memref<64x32xbf16, #tpu.memory_space<vmem>>, vector<64x32xbf16>
    %c0_4 = arith.constant 0 : index
    %c0_5 = arith.constant 0 : index
    %5 = vector.load %arg9[%c0_4, %c0_5] : memref<16x32xf32, #tpu.memory_space<vmem>>, vector<16x32xf32>
    %cst = arith.constant dense<0.000000e+00> : vector<16x32xf32>
    %6 = tpu.matmul %3, %4, %cst {dimension_numbers = #tpu.dot_dimension_numbers<[1], [0], [0], [1], [0, 0, 1, 1], [], []>} : vector<16x64xbf16>, vector<64x32xbf16>, vector<16x32xf32> -> vector<16x32xf32>
    %7 = arith.addf %5, %6 : vector<16x32xf32>
    %c0_6 = arith.constant 0 : index
    %c0_7 = arith.constant 0 : index
    %8 = vector.load %arg9[%c0_6, %c0_7] : memref<16x32xf32, #tpu.memory_space<vmem>>, vector<16x32xf32>
    tpu.vector_store %arg9[%c0_6, %c0_7], %7 {strides = array<i32>} : memref<16x32xf32, #tpu.memory_space<vmem>>, vector<16x32xf32>,
    %c0_i32_8 = arith.constant 0 : i32
    %9 = arith.cmpi eq, %arg1, %c0_i32_8 : i32
    %10 = arith.extui %9 : i1 to i32
    %c0_i32_9 = arith.constant 0 : i32
    %11 = arith.cmpi ne, %10, %c0_i32_9 : i32
    scf.if %11 {
      %c0_10 = arith.constant 0 : index
      %c0_11 = arith.constant 0 : index
      %12 = vector.load %arg9[%c0_10, %c0_11] : memref<16x32xf32, #tpu.memory_space<vmem>>, vector<16x32xf32>
      %c0_12 = arith.constant 0 : index
      %c0_13 = arith.constant 0 : index
      %13 = vector.load %arg4[%c0_12, %c0_13] : memref<1x32xf32, #tpu.memory_space<vmem>>, vector<1x32xf32>
      %14 = vector.broadcast %13 : vector<1x32xf32> to vector<16x32xf32>
      %15 = arith.addf %12, %14 : vector<16x32xf32>
      %c0_14 = arith.constant 0 : index
      %c0_15 = arith.constant 0 : index
      %16 = vector.load %arg5[%c0_14, %c0_15] : memref<16x32xf32, #tpu.memory_space<vmem>>, vector<16x32xf32>
      %17 = arith.addf %15, %16 : vector<16x32xf32>
      %cst_16 = arith.constant dense<0.000000e+00> : vector<16xf32>
      %18 = vector.multi_reduction <add>, %17, %cst_16 [1] : vector<16x32xf32> to vector<16xf32>
      %19 = vector.shape_cast %18 : vector<16xf32> to vector<16x1xf32>
      %cst_17 = arith.constant 3.200000e+01 : f32
      %20 = vector.broadcast %cst_17 : f32 to vector<16x1xf32>
      %21 = arith.divf %19, %20 : vector<16x1xf32>
      %22 = vector.broadcast %21 : vector<16x1xf32> to vector<16x32xf32>
      %23 = arith.subf %17, %22 : vector<16x32xf32>
      %24 = arith.mulf %23, %23 : vector<16x32xf32>
      %cst_18 = arith.constant dense<0.000000e+00> : vector<16xf32>
      %25 = vector.multi_reduction <add>, %24, %cst_18 [1] : vector<16x32xf32> to vector<16xf32>
      %26 = vector.shape_cast %25 : vector<16xf32> to vector<16x1xf32>
      %cst_19 = arith.constant 3.200000e+01 : f32
      %27 = vector.broadcast %cst_19 : f32 to vector<16x1xf32>
      %28 = arith.divf %26, %27 : vector<16x1xf32>
      %cst_20 = arith.constant 9.99999996E-13 : f32
      %29 = vector.broadcast %cst_20 : f32 to vector<16x1xf32>
      %30 = arith.addf %28, %29 : vector<16x1xf32>
      %31 = math.rsqrt %30 : vector<16x1xf32>
      %32 = vector.broadcast %31 : vector<16x1xf32> to vector<16x32xf32>
      %33 = arith.mulf %23, %32 : vector<16x32xf32>
      %c0_21 = arith.constant 0 : index
      %c0_22 = arith.constant 0 : index
      %34 = vector.load %arg6[%c0_21, %c0_22] : memref<1x32xf32, #tpu.memory_space<vmem>>, vector<1x32xf32>
      %35 = vector.broadcast %34 : vector<1x32xf32> to vector<16x32xf32>
      %36 = arith.mulf %33, %35 : vector<16x32xf32>
      %c0_23 = arith.constant 0 : index
      %c0_24 = arith.constant 0 : index
      %37 = vector.load %arg7[%c0_23, %c0_24] : memref<1x32xf32, #tpu.memory_space<vmem>>, vector<1x32xf32>
      %38 = vector.broadcast %37 : vector<1x32xf32> to vector<16x32xf32>
      %39 = arith.addf %36, %38 : vector<16x32xf32>
      %c0_25 = arith.constant 0 : index
      %c0_26 = arith.constant 0 : index
      %40 = vector.load %arg8[%c0_25, %c0_26] : memref<16x32xf32, #tpu.memory_space<vmem>>, vector<16x32xf32>
      tpu.vector_store %arg8[%c0_25, %c0_26], %39 {strides = array<i32>} : memref<16x32xf32, #tpu.memory_space<vmem>>, vector<16x32xf32>,
    } else {
    }
    return
  }
  func.func @transform_0(%arg0: i32, %arg1: i32) -> (i32, i32) {
    %c0_i32 = arith.constant 0 : i32
    return %arg0, %arg1 : i32, i32
  }
  func.func @transform_1(%arg0: i32, %arg1: i32) -> (i32, i32) {
    %c0_i32 = arith.constant 0 : i32
    %c0_i32_0 = arith.constant 0 : i32
    return %arg1, %c0_i32 : i32, i32
  }
  func.func @transform_2(%arg0: i32, %arg1: i32) -> (i32, i32) {
    %c0_i32 = arith.constant 0 : i32
    %c0_i32_0 = arith.constant 0 : i32
    %c0_i32_1 = arith.constant 0 : i32
    return %c0_i32, %c0_i32_0 : i32, i32
  }
  func.func @transform_3(%arg0: i32, %arg1: i32) -> (i32, i32) {
    %c0_i32 = arith.constant 0 : i32
    %c0_i32_0 = arith.constant 0 : i32
    return %arg0, %c0_i32 : i32, i32
  }
  func.func @transform_4(%arg0: i32, %arg1: i32) -> (i32, i32) {
    %c0_i32 = arith.constant 0 : i32
    %c0_i32_0 = arith.constant 0 : i32
    %c0_i32_1 = arith.constant 0 : i32
    return %c0_i32, %c0_i32_0 : i32, i32
  }
  func.func @transform_5(%arg0: i32, %arg1: i32) -> (i32, i32) {
    %c0_i32 = arith.constant 0 : i32
    %c0_i32_0 = arith.constant 0 : i32
    %c0_i32_1 = arith.constant 0 : i32
    return %c0_i32, %c0_i32_0 : i32, i32
  }
  func.func @transform_6(%arg0: i32, %arg1: i32) -> (i32, i32) {
    %c0_i32 = arith.constant 0 : i32
    %c0_i32_0 = arith.constant 0 : i32
    return %arg0, %c0_i32 : i32, i32
  }
}

module attributes {stable_mosaic.version = 11 : i64} {
  func.func @_matmul_kernel(%arg0: i32, %arg1: i32, %arg2: i32, %arg3: memref<16x32xf32, #tpu.memory_space<vmem>>, %arg4: memref<32x256xbf16, #tpu.memory_space<vmem>>, %arg5: memref<1x256xf32, #tpu.memory_space<vmem>>, %arg6: memref<16x256xf32, #tpu.memory_space<vmem>>, %arg7: memref<16x256xf32, #tpu.memory_space<vmem>>) attributes {dimension_semantics = [#tpu.dimension_semantics<parallel>, #tpu.dimension_semantics<parallel>, #tpu.dimension_semantics<arbitrary>], iteration_bounds = array<i64: 1, 1, 1>, scalar_prefetch = 0 : i64, scratch_operands = 1 : i64, tpu.core_type = #tpu.core_type<tc>, window_params = [{transform_indices = @transform_0, window_bounds = array<i64: 16, 32>}, {transform_indices = @transform_1, window_bounds = array<i64: 32, 256>}, {transform_indices = @transform_2, window_bounds = array<i64: 1, 256>}, {transform_indices = @transform_3, window_bounds = array<i64: 16, 256>}]} {
    %c0_i32 = arith.constant 0 : i32
    %0 = arith.cmpi eq, %arg2, %c0_i32 : i32
    %1 = arith.extui %0 : i1 to i32
    %c0_i32_0 = arith.constant 0 : i32
    %2 = arith.cmpi ne, %1, %c0_i32_0 : i32
    scf.if %2 {
      %cst_10 = arith.constant 0.000000e+00 : f32
      %13 = vector.broadcast %cst_10 : f32 to vector<16x256xf32>
      %c0_11 = arith.constant 0 : index
      %c0_12 = arith.constant 0 : index
      %14 = vector.load %arg7[%c0_11, %c0_12] : memref<16x256xf32, #tpu.memory_space<vmem>>, vector<16x256xf32>
      tpu.vector_store %arg7[%c0_11, %c0_12], %13 {strides = array<i32>} : memref<16x256xf32, #tpu.memory_space<vmem>>, vector<16x256xf32>,
    } else {
    }
    %c0 = arith.constant 0 : index
    %c0_1 = arith.constant 0 : index
    %3 = vector.load %arg3[%c0, %c0_1] : memref<16x32xf32, #tpu.memory_space<vmem>>, vector<16x32xf32>
    %4 = arith.truncf %3 : vector<16x32xf32> to vector<16x32xbf16>
    %c0_2 = arith.constant 0 : index
    %c0_3 = arith.constant 0 : index
    %5 = vector.load %arg4[%c0_2, %c0_3] : memref<32x256xbf16, #tpu.memory_space<vmem>>, vector<32x256xbf16>
    %c0_4 = arith.constant 0 : index
    %c0_5 = arith.constant 0 : index
    %6 = vector.load %arg7[%c0_4, %c0_5] : memref<16x256xf32, #tpu.memory_space<vmem>>, vector<16x256xf32>
    %cst = arith.constant dense<0.000000e+00> : vector<16x256xf32>
    %7 = tpu.matmul %4, %5, %cst {dimension_numbers = #tpu.dot_dimension_numbers<[1], [0], [0], [1], [0, 0, 1, 1], [], []>} : vector<16x32xbf16>, vector<32x256xbf16>, vector<16x256xf32> -> vector<16x256xf32>
    %8 = arith.addf %6, %7 : vector<16x256xf32>
    %c0_6 = arith.constant 0 : index
    %c0_7 = arith.constant 0 : index
    %9 = vector.load %arg7[%c0_6, %c0_7] : memref<16x256xf32, #tpu.memory_space<vmem>>, vector<16x256xf32>
    tpu.vector_store %arg7[%c0_6, %c0_7], %8 {strides = array<i32>} : memref<16x256xf32, #tpu.memory_space<vmem>>, vector<16x256xf32>,
    %c0_i32_8 = arith.constant 0 : i32
    %10 = arith.cmpi eq, %arg2, %c0_i32_8 : i32
    %11 = arith.extui %10 : i1 to i32
    %c0_i32_9 = arith.constant 0 : i32
    %12 = arith.cmpi ne, %11, %c0_i32_9 : i32
    scf.if %12 {
      %c0_10 = arith.constant 0 : index
      %c0_11 = arith.constant 0 : index
      %13 = vector.load %arg7[%c0_10, %c0_11] : memref<16x256xf32, #tpu.memory_space<vmem>>, vector<16x256xf32>
      %c0_12 = arith.constant 0 : index
      %c0_13 = arith.constant 0 : index
      %14 = vector.load %arg5[%c0_12, %c0_13] : memref<1x256xf32, #tpu.memory_space<vmem>>, vector<1x256xf32>
      %15 = vector.broadcast %14 : vector<1x256xf32> to vector<16x256xf32>
      %16 = arith.addf %13, %15 : vector<16x256xf32>
      %c0_14 = arith.constant 0 : index
      %c0_15 = arith.constant 0 : index
      %17 = vector.load %arg6[%c0_14, %c0_15] : memref<16x256xf32, #tpu.memory_space<vmem>>, vector<16x256xf32>
      tpu.vector_store %arg6[%c0_14, %c0_15], %16 {strides = array<i32>} : memref<16x256xf32, #tpu.memory_space<vmem>>, vector<16x256xf32>,
    } else {
    }
    return
  }
  func.func @transform_0(%arg0: i32, %arg1: i32, %arg2: i32) -> (i32, i32) {
    %c0_i32 = arith.constant 0 : i32
    return %arg0, %arg2 : i32, i32
  }
  func.func @transform_1(%arg0: i32, %arg1: i32, %arg2: i32) -> (i32, i32) {
    %c0_i32 = arith.constant 0 : i32
    return %arg2, %arg1 : i32, i32
  }
  func.func @transform_2(%arg0: i32, %arg1: i32, %arg2: i32) -> (i32, i32) {
    %c0_i32 = arith.constant 0 : i32
    %c0_i32_0 = arith.constant 0 : i32
    return %c0_i32, %arg1 : i32, i32
  }
  func.func @transform_3(%arg0: i32, %arg1: i32, %arg2: i32) -> (i32, i32) {
    %c0_i32 = arith.constant 0 : i32
    return %arg0, %arg1 : i32, i32
  }
}

</mosaic_0001>

<bundles_post_ra>
// kernel: fwd.11
= control target key start
LH: loop header
LB: loop body
LE: loop exit
PB: predicated region body
PF: predicated region fallthrough
CT: control target
= control target key end

     0   :  { %s544_s12 = smov 0   ;;  %s546_s13 = smov 0   ;;  %s591_s0 = inlined_call_operand.vmem [shape: f32[16,32], index: 0, kind: input, shape index: {}]   ;;  %s592_s1 = inlined_call_operand.vmem [shape: bf16[3,32,32], index: 1, kind: input, shape index: {}]   ;;  %s593_s2 = inlined_call_operand.vmem [shape: f32[3,1,32], index: 2, kind: input, shape index: {}]   ;;  %s594_s3 = inlined_call_operand.vmem [shape: bf16[3,16,32], index: 3, kind: output, shape index: {}]  }
   0x1   :  { %s548_s14 = smov 0  }
   0x2 LB: > { %s32_s15 = sadd.s32 1, %s517_s13  ;;  %p453_p0 = scmp.ge.s32.totalorder %s521_s14, 1  ;;  %s521_s14 = sphi %s548_s14, %s13_s14   ;;  %s517_s13 = sphi %s546_s13, %s596_s13   ;;  %s513_s12 = sphi %s544_s12, %s595_s12  }
   0x3   : > { %p34_p1 = scmp.ge.s32.totalorder %s32_s15, 3  ;;  %p189_p2 = scmp.lt.s32.totalorder %s521_s14, 4 }
   0x5   : > { %s598_s15 = smov (%p34_p1, %s32_s15), 0  ;;  %p190_p3 = pnand %p453_p0, %p189_p2 }
   0x6   : > { %p242_p4 = scmp.lt.s32.totalorder (!%p190_p3), %s513_s12, 2 }
   0x7   : > { %193 = sbr.rel (%p190_p3) target bundleno = 172 (0xac), region = 32 }
   0xc   : > { %vm269_vm0 = vcmask 261120   ;;  %v523_v0 = vmov 0.0   ;;  %s600_s12 = smov (!%p242_p4, %s513_s12), 2  ;;  %v272_v3 = vld [vmem:[%s591_s0] sm:$0xff]  ;;  %v273_v4 = vld [vmem:[%s591_s0 + $0x8] sm:$0xff]  ;;  %vm328_vm1 = vcmask 257024  }
   0xd   : > { %270 = vst.msk [vmem:[#allocation2] sm:$0xff] %vm269_vm0, %v523_v0  ;;  %s469_s16 = sshll.u32 %s600_s12, 4  ;;  %s253_s19 = scalar_lea.vmem %s593_s2, %s600_s12  ;;  %v274_v5 = vpack.c.bf16 %v273_v4, %v272_v3 }
   0xe   : > { %271 = vst.msk [vmem:[#allocation2 + $0x8] sm:$0xff] %vm269_vm0, %v523_v0  ;;  %s249_s22 = scalar_lea.vmem %s592_s1, %s469_s16  ;;  %v498_v10 = vld [vmem:[%s253_s19] ss:$0 sm:$0xff]  ;;  %s470_s27 = sshll.u32 %s600_s12, 3 }
   0xf   : > { %v472_v1 = vld [vmem:[%s249_s22 + $0x8] sm:$0xff]  ;;  %v471_v2 = vld [vmem:[%s249_s22] sm:$0xff]  ;;  %s262_s30 = scalar_lea.vmem %s594_s3, %s470_s27 }
  0x10   : > { %303 = vmatpush.bf16.msra.mxu0 %v472_v1 }
  0x14   : > { %304 = vmatpush.bf16.msra.mxu0 %v471_v2  ;;  %v279_v6 = vld [vmem:[#allocation2] sm:$0xff] }
  0x15   : > { %v280_v9 = vld [vmem:[#allocation2 + $0x8] sm:$0xff] }
  0x17   : > { %466 = vmatmul.msk.bf16.vlgmr.msra.gmra.mxu0 %vm269_vm0, %v274_v5 }
  0x94   : > { %v306_v7 = vpop.f32.mrf.mxu0 }
  0x95   : > { %v311_v8 = vadd.f32 %v306_v7, %v279_v6 }
  0x97   : > { %313 = vst.msk [vmem:[#allocation2] sm:$0xff] %vm269_vm0, %v311_v8 }
  0x9c   : > { %v308_v11 = vpop.f32.mrf.mxu0 }
  0x9d   : > { %v312_v12 = vadd.f32 %v308_v11, %v280_v9 }
  0x9e   : > { %v318_v13 = vld [vmem:[#allocation2] sm:$0xff] }
  0x9f   : > { %v324_v14 = vadd.f32 %v498_v10, %v318_v13  ;;  %314 = vst.msk [vmem:[#allocation2 + $0x8] sm:$0xff] %vm269_vm0, %v312_v12 }
  0xa1   : > { %v326_v15 = vpack.c.bf16 %v324_v14, %v324_v14 }
  0xa3   : > { %329 = vst.msk [vmem:[%s262_s30] sm:$0xf] %vm328_vm1, %v326_v15 }
  0xa6   : > { %v319_v16 = vld [vmem:[#allocation2 + $0x8] sm:$0xff] }
  0xa7   : > { %v325_v17 = vadd.f32 %v498_v10, %v319_v16 }
  0xa9   : > { %v327_v18 = vpack.c.bf16 %v325_v17, %v325_v17 }
  0xab   : > { %330 = vst.msk [vmem:[%s262_s30 + $0x4] sm:$0xf] %vm328_vm1, %v327_v18 }
  0xac PF: > { %s13_s14 = sadd.s32 1, %s521_s14   ;;  %s595_s12 = smov %s517_s13 }
  0xad   : > { %p10_p5 = scmp.ge.s32.totalorder %s13_s14, 5   ;;  %s596_s13 = smov %s598_s15 }
  0xaf   :  { %12 = sbr.rel (!%p10_p5) target bundleno = 2 (0x2), region = 76 }

// kernel: fwd.14
= control target key start
LH: loop header
LB: loop body
LE: loop exit
PB: predicated region body
PF: predicated region fallthrough
CT: control target
= control target key end

     0   :  { %vm19_vm0 = vcmask 523264   ;;  %v121_v1 = vmov 0.0   ;;  %vm43_vm1 = vcmask 261120   ;;  %vm97_vm2 = vcmask 519168   ;;  %s167_s1 = inlined_call_operand.vmem [shape: bf16[32,64], index: 1, kind: input, shape index: {}]   ;;  %s168_s0 = inlined_call_operand.vmem [shape: f32[16,32], index: 0, kind: input, shape index: {}]   ;;  %s169_s2 = inlined_call_operand.vmem [shape: f32[1,64], index: 2, kind: input, shape index: {}]   ;;  %s170_s3 = inlined_call_operand.vmem [shape: bf16[16,64], index: 3, kind: output, shape index: {}]  }
   0x1   :  { %v114_v0 = vld [vmem:[%s167_s1 + $0x8] sm:$0xff]  ;;  %20 = vst.msk [vmem:[#allocation2] sm:$0xff] %vm19_vm0, %v121_v1  ;;  %v113_v2 = vld [vmem:[%s167_s1] sm:$0xff] }
   0x2   :  { %21 = vst.msk [vmem:[#allocation2 + $0x8] sm:$0xff] %vm19_vm0, %v121_v1  ;;  %53 = vmatpush.bf16.msra.mxu0 %v114_v0  ;;  %v22_v3 = vld [vmem:[%s168_s0] sm:$0xff]  ;;  %v23_v4 = vld [vmem:[%s168_s0 + $0x8] sm:$0xff] }
   0x3   :  { %v24_v5 = vpack.c.bf16 %v23_v4, %v22_v3  ;;  %v116_v10 = vld [vmem:[%s169_s2] ss:$0 sm:$0xff] }
   0x6   :  { %54 = vmatpush.bf16.msra.mxu0 %v113_v2 }
   0x8   :  { %v29_v6 = vld [vmem:[#allocation2] sm:$0xff] }
   0x9   :  { %112 = vmatmul.msk.bf16.vlgmr.msra.gmra.mxu0 %vm43_vm1, %v24_v5  ;;  %v30_v9 = vld [vmem:[#allocation2 + $0x8] sm:$0xff] }
  0x86   :  { %v56_v7 = vpop.f32.mrf.mxu0 }
  0x87   :  { %v61_v8 = vadd.f32 %v56_v7, %v29_v6 }
  0x89   :  { %64 = vst.msk [vmem:[#allocation2] sm:$0xff] %vm19_vm0, %v61_v8 }
  0x8e   :  { %v58_v11 = vpop.f32.mrf.mxu0 }
  0x8f   :  { %v62_v12 = vadd.f32 %v58_v11, %v30_v9 }
  0x90   :  { %v69_v13 = vld [vmem:[#allocation2] sm:$0xff] }
  0x91   :  { %v75_v14 = vadd.f32 %v116_v10, %v69_v13  ;;  %65 = vst.msk [vmem:[#allocation2 + $0x8] sm:$0xff] %vm19_vm0, %v62_v12 }
  0x93   :  { %v79_v15 = vmul.f32 0.044715, %v75_v14  ;;  %v77_v28 = vmul.f32 0.5, %v75_v14 }
  0x95   :  { %v81_v16 = vmul.f32 %v79_v15, %v75_v14 }
  0x97   :  { %v83_v17 = vmul.f32 %v81_v16, %v75_v14 }
  0x98   :  { %v70_v18 = vld [vmem:[#allocation2 + $0x8] sm:$0xff] }
  0x99   :  { %v85_v19 = vadd.f32 %v83_v17, %v75_v14  ;;  %v76_v20 = vadd.f32 %v116_v10, %v70_v18 }
  0x9b   :  { %v87_v21 = vmul.f32 0.7978846, %v85_v19  ;;  %v80_v22 = vmul.f32 0.044715, %v76_v20  ;;  %v78_v33 = vmul.f32 0.5, %v76_v20 }
  0x9d   :  { %117 = vtanh.f32 %v87_v21  ;;  %v82_v23 = vmul.f32 %v80_v22, %v76_v20 }
  0x9f   :  { %v84_v24 = vmul.f32 %v82_v23, %v76_v20 }
  0xa1   :  { %v86_v25 = vadd.f32 %v84_v24, %v76_v20 }
  0xa3   :  { %v118_v26 = vpop.eup %117  ;;  %v88_v27 = vmul.f32 0.7978846, %v86_v25 }
  0xa4   :  { %v91_v29 = vadd.f32 1.0, %v118_v26 }
  0xa5   :  { %119 = vtanh.f32 %v88_v27 }
  0xa6   :  { %v93_v30 = vmul.f32 %v91_v29, %v77_v28 }
  0xa8   :  { %v95_v31 = vpack.c.bf16 %v93_v30, %v93_v30 }
  0xaa   :  { %98 = vst.msk [vmem:[%s170_s3] sm:$0xf] %vm97_vm2, %v95_v31 }
  0xab   :  { %v120_v32 = vpop.eup %119 }
  0xac   :  { %v92_v34 = vadd.f32 1.0, %v120_v32 }
  0xae   :  { %v94_v35 = vmul.f32 %v92_v34, %v78_v33 }
  0xb0   :  { %v96_v36 = vpack.c.bf16 %v94_v35, %v94_v35 }
  0xb2   :  { %99 = vst.msk [vmem:[%s170_s3 + $0x4] sm:$0xf] %vm97_vm2, %v96_v36 }

// kernel: fwd.13
= control target key start
LH: loop header
LB: loop body
LE: loop exit
PB: predicated region body
PF: predicated region fallthrough
CT: control target
= control target key end

     0   :  { %vm28_vm0 = vcmask 261120   ;;  %v189_v1 = vmov 0.0   ;;  %v190_v21 = vmov 32.0   ;;  %s267_s1 = inlined_call_operand.vmem [shape: bf16[32,32], index: 1, kind: input, shape index: {}]   ;;  %s268_s0 = inlined_call_operand.vmem [shape: bf16[16,32], index: 0, kind: input, shape index: {}]   ;;  %s269_s2 = inlined_call_operand.vmem [shape: f32[1,32], index: 2, kind: input, shape index: {}]   ;;  %s270_s3 = inlined_call_operand.vmem [shape: f32[16,32], index: 3, kind: input, shape index: {}]   ;;  %s271_s4 = inlined_call_operand.vmem [shape: f32[1,32], index: 4, kind: input, shape index: {}]   ;;  %s272_s5 = inlined_call_operand.vmem [shape: f32[1,32], index: 5, kind: input, shape index: {}]   ;;  %s273_s6 = inlined_call_operand.vmem [shape: f32[16,32], index: 6, kind: output, shape index: {}]  }
   0x1   :  { %v177_v0 = vld [vmem:[%s267_s1 + $0x8] sm:$0xff]  ;;  %29 = vst.msk [vmem:[#allocation2] sm:$0xff] %vm28_vm0, %v189_v1  ;;  %v176_v2 = vld [vmem:[%s267_s1] sm:$0xff]  ;;  %183 = vrcp.f32 %v190_v21 }
   0x2   :  { %30 = vst.msk [vmem:[#allocation2 + $0x8] sm:$0xff] %vm28_vm0, %v189_v1  ;;  %66 = vmatpush.bf16.msra.mxu0 %v177_v0  ;;  %v175_v3 = vld [vmem:[%s268_s0] sm:$0xff]  ;;  %v90_v17 = vld [vmem:[%s270_s3 + $0x8] sm:$0xff] }
   0x3   :  { %v180_v8 = vld [vmem:[%s269_s2] ss:$0 sm:$0xff] }
   0x4   :  { %v89_v12 = vld [vmem:[%s270_s3] sm:$0xff] }
   0x5   :  { %v181_v52 = vld [vmem:[%s271_s4] ss:$0 sm:$0xff] }
   0x6   :  { %67 = vmatpush.bf16.msra.mxu0 %v176_v2  ;;  %v182_v55 = vld [vmem:[%s272_s5] ss:$0 sm:$0xff] }
   0x7   :  { %v184_v22 = vpop.eup %183 }
   0x8   :  { %v37_v4 = vld [vmem:[#allocation2] sm:$0xff]  ;;  %v100_v23 = vmul.f32 32.0, %v184_v22  ;;  %vm104_vm1 = vweird.f32 %v184_v22 }
   0x9   :  { %174 = vmatmul.msk.bf16.vlgmr.msra.gmra.mxu0 %vm28_vm0, %v175_v3  ;;  %v38_v7 = vld [vmem:[#allocation2 + $0x8] sm:$0xff] }
   0xa   :  { %v101_v24 = vsub.f32 1.0, %v100_v23 }
   0xc   :  { %v102_v25 = vmul.f32 %v184_v22, %v101_v24 }
   0xe   :  { %v103_v26 = vadd.f32 %v184_v22, %v102_v25 }
  0x10   :  { %v105_v27 = vsel %vm104_vm1, %v184_v22, %v103_v26 }
  0x86   :  { %v69_v5 = vpop.f32.mrf.mxu0 }
  0x87   :  { %v74_v6 = vadd.f32 %v69_v5, %v37_v4 }
  0x89   :  { %76 = vst.msk [vmem:[#allocation2] sm:$0xff] %vm28_vm0, %v74_v6 }
  0x8e   :  { %v71_v9 = vpop.f32.mrf.mxu0 }
  0x8f   :  { %v75_v10 = vadd.f32 %v71_v9, %v38_v7 }
  0x90   :  { %v81_v11 = vld [vmem:[#allocation2] sm:$0xff] }
  0x91   :  { %77 = vst.msk [vmem:[#allocation2 + $0x8] sm:$0xff] %vm28_vm0, %v75_v10  ;;  %v87_v13 = vadd.f32 %v180_v8, %v81_v11 }
  0x93   :  { %v91_v14 = vadd.f32 %v89_v12, %v87_v13 }
  0x95   :  { %v93_v15 = vsel %vm28_vm0, %v91_v14, 0.0 }
  0x96   :  { %94 = vadd.xlane.f32.xlu0 %v93_v15 }
  0x98   :  { %v82_v16 = vld [vmem:[#allocation2 + $0x8] sm:$0xff] }
  0x99   :  { %v88_v18 = vadd.f32 %v180_v8, %v82_v16 }
  0x9b   :  { %v92_v19 = vadd.f32 %v90_v17, %v88_v18 }
  0x9d   :  { %v96_v20 = vsel %vm28_vm0, %v92_v19, 0.0 }
  0x9e   :  { %97 = vadd.xlane.f32.xlu0 %v96_v20 }
 0x109   :  { %v95_v28 = vpop.xlane.xlu0 %94 }
 0x10a   :  { %v106_v29 = vmul.f32 %v105_v27, %v95_v28 }
 0x10c   :  { %v108_v30 = vsub.f32 %v91_v14, %v106_v29 }
 0x10e   :  { %v110_v31 = vmul.f32 %v108_v30, %v108_v30 }
 0x110   :  { %v112_v32 = vsel %vm28_vm0, %v110_v31, 0.0 }
 0x111   :  { %113 = vadd.xlane.f32.xlu1 %v112_v32  ;;  %v98_v33 = vpop.xlane.xlu0 %97 }
 0x112   :  { %v107_v34 = vmul.f32 %v105_v27, %v98_v33 }
 0x114   :  { %v109_v35 = vsub.f32 %v92_v19, %v107_v34 }
 0x116   :  { %v111_v36 = vmul.f32 %v109_v35, %v109_v35 }
 0x118   :  { %v115_v37 = vsel %vm28_vm0, %v111_v36, 0.0 }
 0x119   :  { %116 = vadd.xlane.f32.xlu1 %v115_v37 }
 0x184   :  { %v114_v38 = vpop.xlane.xlu1 %113 }
 0x185   :  { %v118_v39 = vmul.f32 %v114_v38, %v105_v27 }
 0x187   :  { %v120_v40 = vadd.f32 1e-12, %v118_v39 }
 0x189   :  { %185 = vrsqrt.f32 %v120_v40  ;;  %vm128_vm3 = vweird.f32 %v120_v40 }
 0x18c   :  { %v117_v41 = vpop.xlane.xlu1 %116 }
 0x18d   :  { %v119_v42 = vmul.f32 %v117_v41, %v105_v27 }
 0x18f   :  { %v186_v43 = vpop.eup %185  ;;  %v121_v44 = vadd.f32 1e-12, %v119_v42 }
 0x190   :  { %v123_v45 = vmul.f32 %v186_v43, %v120_v40  ;;  %vm129_vm2 = vweird.f32 %v186_v43 }
 0x191   :  { %187 = vrsqrt.f32 %v121_v44  ;;  %vm130_vm4 = vmor %vm128_vm3, %vm129_vm2  ;;  %vm138_vm6 = vweird.f32 %v121_v44 }
 0x192   :  { %v124_v46 = vmul.f32 %v186_v43, %v123_v45 }
 0x194   :  { %v125_v47 = vmul.f32 0.5, %v124_v46 }
 0x196   :  { %v126_v48 = vsub.f32 1.5, %v125_v47 }
 0x197   :  { %v188_v49 = vpop.eup %187 }
 0x198   :  { %v127_v50 = vmul.f32 %v186_v43, %v126_v48  ;;  %v133_v51 = vmul.f32 %v188_v49, %v121_v44  ;;  %vm139_vm5 = vweird.f32 %v188_v49 }
 0x199   :  { %vm140_vm7 = vmor %vm138_vm6, %vm139_vm5 }
 0x19a   :  { %v131_v53 = vsel %vm130_vm4, %v186_v43, %v127_v50  ;;  %v134_v54 = vmul.f32 %v188_v49, %v133_v51 }
 0x19b   :  { %v142_v56 = vmul.f32 %v131_v53, %v108_v30 }
 0x19c   :  { %v135_v57 = vmul.f32 0.5, %v134_v54 }
 0x19d   :  { %v148_v58 = vmul.f32 %v181_v52, %v142_v56 }
 0x19e   :  { %v136_v59 = vsub.f32 1.5, %v135_v57 }
 0x19f   :  { %v154_v60 = vadd.f32 %v182_v55, %v148_v58 }
 0x1a0   :  { %v137_v61 = vmul.f32 %v188_v49, %v136_v59 }
 0x1a1   :  { %156 = vst.msk [vmem:[%s273_s6] sm:$0xff] %vm28_vm0, %v154_v60 }
 0x1a2   :  { %v141_v62 = vsel %vm140_vm7, %v188_v49, %v137_v61 }
 0x1a3   :  { %v143_v63 = vmul.f32 %v141_v62, %v109_v35 }
 0x1a5   :  { %v149_v0 = vmul.f32 %v181_v52, %v143_v63 }
 0x1a7   :  { %v155_v1 = vadd.f32 %v182_v55, %v149_v0 }
 0x1a9   :  { %157 = vst.msk [vmem:[%s273_s6 + $0x8] sm:$0xff] %vm28_vm0, %v155_v1 }

// kernel: fwd.12
= control target key start
LH: loop header
LB: loop body
LE: loop exit
PB: predicated region body
PF: predicated region fallthrough
CT: control target
= control target key end

     0   :  { %11 = vsyncpa [#allocation3], 0  ;;  %s1248_s0 = inlined_call_operand.vmem [shape: bf16[3,2,8,32], index: 0, kind: input, shape index: {}, may-alias: {0,1,2}]   ;;  %s1249_s1 = inlined_call_operand.vmem [shape: bf16[3,2,8,32], index: 1, kind: input, shape index: {}, may-alias: {0,1,2}]   ;;  %s1250_s2 = inlined_call_operand.vmem [shape: bf16[3,2,8,32], index: 2, kind: input, shape index: {}, may-alias: {0,1,2}]   ;;  %s1251_s3 = inlined_call_operand.vmem [shape: f32[2,1,8], index: 3, kind: input, shape index: {}]   ;;  %s1252_s4 = inlined_call_operand.vmem [shape: bf16[2,8,32], index: 4, kind: output, shape index: {0}]   ;;  %s1253_s5 = inlined_call_operand.hbm [shape: f32[2,4,8,8], index: 5, kind: output, shape index: {1}]  }
   0x1   :  { %13 = vsyncpa [#allocation3 + $0x1], 0  ;;  %s1055_s18 = smov 0   ;;  %s1057_s19 = smov 0  }
   0x2   :  { %s1059_s20 = smov 0   ;;  %s1061_s21 = smov 0  }
   0x3   :  { %s1063_s22 = smov 0   ;;  %s1065_s23 = smov 0  }
   0x4 LB: > { %s824_s24 = sadd.s32 4294967295, %s1016_s23   ;;  %s825_s25 = sadd.s32 4294967294, %s1016_s23   ;;  %s1016_s23 = sphi %s1065_s23, %s19_s23   ;;  %s1012_s22 = sphi %s1063_s22, %s1260_s22   ;;  %s1008_s21 = sphi %s1061_s21, %s1259_s21   ;;  %s1004_s20 = sphi %s1059_s20, %s1258_s20   ;;  %s1000_s19 = sphi %s1057_s19, %s1257_s19   ;;  %s996_s18 = sphi %s1055_s18, %s1256_s18  }
   0x5   : > { %s31_s26 = sadd.s32 1, %s1012_s22  ;;  %s178_s27 = sadd.s32 1, %s1004_s20 }
   0x6   : > { %p33_p0 = scmp.ge.s32.totalorder %s31_s26, 2  ;;  %p188_p1 = scmp.ne.s32.totalorder %s1004_s20, %s1000_s19 }
   0x7   : > { %p189_p2 = scmp.eq.s32.totalorder %s824_s24, 1  ;;  %p194_p3 = scmp.ne.s32.totalorder %s1000_s19, %s996_s18 }
   0x8   : > { %s1262_s26 = smov (%p33_p0, %s31_s26), 0  ;;  %p195_p5 = scmp.eq.s32.totalorder %s825_s25, 1 }
   0x9   : > { %p1095_p4 = por %p189_p2, %p188_p1  ;;  %s173_s29 = ssub.s32 %s1012_s22, %s1262_s26 }
   0xa   : > { %p828_p6 = scmp.ge.s32.totalorder %s1016_s23, 1  ;;  %p176_p7 = scmp.eq.s32.totalorder %s173_s29, 0 }
   0xb   : > { %p1102_p8 = por %p195_p5, %p194_p3  ;;  %p251_p9 = scmp.lt.s32.totalorder %s1016_s23, 3 }
   0xc   : > { %s1108_s6 = scalar_select %p176_p7, %s1004_s20, %s178_s27  }
   0xd   : > { %p252_p10 = pnand %p828_p6, %p251_p9 }
   0xe   : > { %p307_p11 = scmp.lt.s32.totalorder (!%p252_p10), %s1008_s21, 1  ;;  %s1018_s24 = smov (!%p252_p10), 112  }
   0xf   : > { %255 = sbr.rel (%p252_p10) target bundleno = 1094 (0x446), region = 36  ;;  %s1019_s25 = smov (!%p252_p10), 104  }
  0x10   : > { %s1020_s27 = smov (!%p252_p10), 120   ;;  %s304_s10 = sand.u32 (!%p252_p10), 1, %s1000_s19  }
  0x11   : > { %s858_s16 = sshll.u32 (!%p252_p10), %s1008_s21, 5 }
  0x14   : > { %s308_s7 = scalar_select %p307_p11, %s1008_s21, 1  ;;  %vm346_vm0 = vcmask 64512   ;;  %vm387_vm1 = vcmask 1043456   ;;  %vm405_vm2 = vcmask 60416  }
  0x16   : > { %s1112_s8 = sshll.u32 %s308_s7, 2  ;;  %s332_s17 = scalar_lea.vmem %s1251_s3, %s308_s7 }
  0x17   : > { %s1118_s11 = scalar_lea.vmem %s1249_s1, %s1112_s8  ;;  %s1126_s14 = scalar_lea.vmem %s1248_s0, %s1112_s8  ;;  %v1140_v14 = vld [vmem:[%s332_s17] ss:$0 sm:$0xff] }
  0x18   : > { %v834_v0 = vld [vmem:[%s1118_s11 + $0x8] sm:$0xf]  ;;  %v343_v2 = vld [vmem:[%s1126_s14] sm:$0xf]  ;;  %s1156_s9 = scalar_lea.vmem %s1250_s2, %s1112_s8  ;;  %s1178_s15 = scalar_lea.vmem %s1252_s4, %s1112_s8 }
  0x19   : > { %v351_v1 = vsel %vm346_vm0, %v834_v0, 0  ;;  %v843_v3 = vld [vmem:[%s1118_s11 + $0x8] sm:$0xf]  ;;  %v486_v9 = vld [vmem:[%s1126_s14] sm:$0xf]  ;;  %s1021_s8 = smov 8  }
  0x1a   : > { %360 = vmatpush.bf16.xpose.msra.mxu0 %v351_v1  ;;  %v495_v4 = vunpack.c.l.b16 %v843_v3  ;;  %v848_v5 = vld [vmem:[%s1118_s11 + $0x8] sm:$0xf]  ;;  %v490_v10 = vunpack.c.l.b16 %v486_v9  ;;  %v565_v12 = vld [vmem:[%s1126_s14] sm:$0xf]  ;;  %v835_v37 = vld [vmem:[%s1156_s9 + $0x10] sm:$0xf] }
  0x1b   : > { %v574_v7 = vunpack.c.l.b16 %v848_v5  ;;  %v569_v13 = vunpack.c.l.b16 %v565_v12  ;;  %v838_v21 = vld [vmem:[%s1118_s11 + $0x8] sm:$0xf]  ;;  %v407_v34 = vld [vmem:[%s1126_s14] sm:$0xf]  ;;  %v389_v38 = vsel %vm387_vm1, %v835_v37, 0  ;;  %s829_s11 = sshll.u32 %s304_s10, 5 }
  0x1c   : > { %v496_v6 = vpack.c.b16 %v495_v4, %v495_v4  ;;  %v491_v11 = vpack.c.b16 %v490_v10, %v490_v10  ;;  %v416_v22 = vunpack.c.l.b16 %v838_v21  ;;  %v411_v35 = vunpack.c.l.b16 %v407_v34  ;;  %398 = vmatpush.bf16.msra.mxu1 %v389_v38  ;;  %s1165_s12 = scalar_lea.vmem [#allocation2], %s829_s11  ;;  %v849_v21 = vld [vmem:[%s1156_s9 + $0x10] sm:$0xf]  ;;  %s652_s7 = scalar_lea.sflag [#allocation3], %s304_s10 }
  0x1d   : > { %v575_v8 = vpack.c.b16 %v574_v7, %v574_v7  ;;  %v570_v17 = vpack.c.b16 %v569_v13, %v569_v13  ;;  %s958_s14 = scalar_lea.hbm %s1253_s5, 64 }
  0x1e   : > { %497 = vrot.lane.b32.xlu2 %v496_v6, %s1018_s24  ;;  %v417_v23 = vpack.c.b16 %v416_v22, %v416_v22  ;;  %v412_v36 = vpack.c.b16 %v411_v35, %v411_v35 }
  0x21   : > { %836 = vmatmul.msk.bf16.vlgmr.msra.gmra.mxu0 %vm346_vm0, %v343_v2 }
  0x26   : > { %576 = vrot.lane.b32.xlu2 %v575_v8, %s1019_s25 }
  0x2e   : > { %492 = vrot.lane.b32.xlu2 %v491_v11, %s1018_s24  ;;  %v839_v11 = vld [vmem:[%s1156_s9 + $0x10] sm:$0xf] }
  0x2f   : > { %v456_v13 = vunpack.c.l.b16 %v839_v11 }
  0x36   : > { %571 = vrot.lane.b32.xlu2 %v570_v17, %s1019_s25 }
  0x78   : > { %v498_v24 = vpop.permute.xlu2 %497 }
  0x79   : > { %v503_v39 = vsel %vm346_vm0, %v498_v24, 0 }
  0x7a   : > { %512 = vmatpush.bf16.xpose.msrb.mxu1 %v503_v39 }
  0x80   : > { %v577_v25 = vpop.permute.xlu2 %576 }
  0x81   : > { %v582_v30 = vsel %vm346_vm0, %v577_v25, 0 }
  0x82   : > { %591 = vmatpush.bf16.xpose.msrb.mxu0 %v582_v30 }
  0x88   : > { %v493_v29 = vpop.permute.xlu2 %492 }
  0x90   : > { %v572_v33 = vpop.permute.xlu2 %571 }
  0x91   : > { %850 = vmatmul.msk.bf16.vlgmr.msrb.gmra.mxu0 %vm346_vm0, %v572_v33 }
  0x9e   : > { %v362_v15 = vpop.f32.mrf.mxu0 }
  0x9f   : > { %v366_v16 = vmul.f32 0.17677669, %v362_v15  ;;  %v457_v15 = vpack.c.b16 %v456_v13, %v456_v13 }
  0xa1   : > { %v370_v18 = vadd.f32 %v1140_v14, %v366_v16 }
  0xa3   : > { %v371_v19 = vsel %vm346_vm0, %v370_v18, -inf }
  0xa4   : > { %372 = vmax.xlane.f32.xlu0 %v371_v19  ;;  %v844_v19 = vld [vmem:[%s1156_s9 + $0x10] sm:$0xf] }
  0xa6   : > { %v364_v20 = vpop.f32.mrf.mxu0 }
  0xa7   : > { %v535_v20 = vunpack.c.l.b16 %v844_v19 }
  0xa9   : > { %v536_v22 = vpack.c.b16 %v535_v20, %v535_v20 }
  0xb8   : > { %418 = vrot.lane.b32.xlu0 %v417_v23, %s1020_s27  ;;  %v614_v23 = vunpack.c.l.b16 %v849_v21 }
  0xba   : > { %v615_v24 = vpack.c.b16 %v614_v23, %v614_v23 }
 0x10e   : > { %v593_v46 = vpop.f32.mrf.mxu0 }
 0x10f   : > { %v597_v47 = vmul.f32 0.17677669, %v593_v46 }
 0x111   : > { %v598_v48 = vadd.f32 %v1140_v14, %v597_v47 }
 0x113   : > { %v599_v49 = vsel %vm346_vm0, %v598_v48, -inf }
 0x116   : > { %v595_v50 = vpop.f32.mrf.mxu0 }
 0x117   : > { %v373_v26 = vpop.xlane.xlu0 %372 }
 0x118   : > { %v374_v27 = vsub.f32 %v370_v18, %v373_v26 }
 0x11a   : > { %v375_v28 = vmul.f32 1.442695, %v374_v27 }
 0x11c   : > { %922 = vpow2.f32 %v375_v28 }
 0x122   : > { %v923_v31 = vpop.eup %922 }
 0x123   : > { %v377_v32 = vsel %vm346_vm0, %v923_v31, 0.0 }
 0x124   : > { %378 = vadd.xlane.f32.xlu1 %v377_v32 }
 0x12a   : > { %v419_v40 = vpop.permute.xlu0 %418 }
 0x12b   : > { %v424_v41 = vsel %vm346_vm0, %v419_v40, 0 }
 0x12c   : > { %433 = vmatpush.bf16.xpose.msra.mxu2 %v424_v41 }
 0x13d   : > { %413 = vrot.lane.b32.xlu1 %v412_v36, %s1020_s27 }
 0x167   : > { %600 = vmax.xlane.f32.xlu1 %v599_v49 }
 0x197   : > { %v379_v42 = vpop.xlane.xlu1 %378 }
 0x198   : > { %924 = vrcp.f32 %v379_v42 }
 0x19e   : > { %v925_v43 = vpop.eup %924 }
 0x19f   : > { %v381_v44 = vmul.f32 %v925_v43, %v923_v31 }
 0x1a1   : > { %382 = vst.msk [vmem:[%s1165_s12] sm:$0xff] %vm346_vm0, %v381_v44  ;;  %v383_v45 = vpack.c.bf16 %v381_v44, %v381_v44 }
 0x1a3   : > { %837 = vmatmul.msk.bf16.vlgmr.msra.gmra.mxu1 %vm346_vm0, %v383_v45 }
 0x1af   : > { %v414_v51 = vpop.permute.xlu1 %413 }
 0x1b0   : > { %840 = vmatmul.msk.bf16.vlgmr.msra.gmra.mxu2 %vm346_vm0, %v414_v51 }
 0x1b3   : > { %845 = vmatmul.msk.bf16.vlgmr.msrb.gmra.mxu1 %vm346_vm0, %v493_v29 }
 0x1da   : > { %v601_v3 = vpop.xlane.xlu1 %600 }
 0x1db   : > { %v602_v7 = vsub.f32 %v598_v48, %v601_v3 }
 0x1dd   : > { %v603_v9 = vmul.f32 1.442695, %v602_v7 }
 0x220   : > { %v400_v52 = vpop.f32.mrf.mxu1 }
 0x221   : > { %v404_v53 = vpack.c.bf16 %v400_v52, %v400_v52 }
 0x223   : > { %406 = vst.msk [vmem:[%s1178_s15] sm:$0xf] %vm405_vm2, %v404_v53 }
 0x228   : > { %v402_v54 = vpop.f32.mrf.mxu1 }
 0x230   : > { %v514_v55 = vpop.f32.mrf.mxu1 }
 0x231   : > { %v518_v56 = vmul.f32 0.17677669, %v514_v55 }
 0x233   : > { %v435_v57 = vpop.f32.mrf.mxu2  ;;  %v519_v58 = vadd.f32 %v1140_v14, %v518_v56 }
 0x234   : > { %v439_v59 = vmul.f32 0.17677669, %v435_v57 }
 0x235   : > { %v520_v60 = vsel %vm346_vm0, %v519_v58, -inf }
 0x236   : > { %521 = vmax.xlane.f32.xlu2 %v520_v60  ;;  %v440_v61 = vadd.f32 %v1140_v14, %v439_v59 }
 0x238   : > { %v516_v62 = vpop.f32.mrf.mxu1  ;;  %v441_v63 = vsel %vm346_vm0, %v440_v61, -inf }
 0x239   : > { %442 = vmax.xlane.f32.xlu0 %v441_v63 }
 0x23b   : > { %v437_v0 = vpop.f32.mrf.mxu2 }
 0x24e   : > { %458 = vrot.lane.b32.xlu2 %v457_v15, %s1020_s27  ;;  %s669_s27 = sshll.u32 %s1165_s12, 4  ;;  %s670_s27 = int_to_ptr.vmem [resolvable:$true] %s669_s27 }
 0x2a9   : > { %v522_v1 = vpop.xlane.xlu2 %521 }
 0x2aa   : > { %v523_v2 = vsub.f32 %v519_v58, %v522_v1 }
 0x2ac   : > { %v524_v4 = vmul.f32 1.442695, %v523_v2  ;;  %v443_v5 = vpop.xlane.xlu0 %442 }
 0x2ad   : > { %v444_v6 = vsub.f32 %v440_v61, %v443_v5 }
 0x2ae   : > { %926 = vpow2.f32 %v524_v4 }
 0x2af   : > { %v445_v8 = vmul.f32 1.442695, %v444_v6 }
 0x2b1   : > { %928 = vpow2.f32 %v445_v8  ;;  %v459_v25 = vpop.permute.xlu2 %458 }
 0x2b2   : > { %930 = vpow2.f32 %v603_v9  ;;  %v464_v26 = vsel %vm387_vm1, %v459_v25, 0 }
 0x2b3   : > { %473 = vmatpush.bf16.msra.mxu3 %v464_v26 }
 0x2b4   : > { %v927_v10 = vpop.eup %926 }
 0x2b5   : > { %v526_v12 = vsel %vm346_vm0, %v927_v10, 0.0 }
 0x2b6   : > { %527 = vadd.xlane.f32.xlu1 %v526_v12 }
 0x2b7   : > { %v929_v14 = vpop.eup %928 }
 0x2b8   : > { %v447_v16 = vsel %vm346_vm0, %v929_v14, 0.0  ;;  %v931_v17 = vpop.eup %930 }
 0x2b9   : > { %448 = vadd.xlane.f32.xlu0 %v447_v16  ;;  %v605_v18 = vsel %vm346_vm0, %v931_v17, 0.0 }
 0x2c1   : > { %606 = vadd.xlane.f32.xlu0 %v605_v18 }
 0x2cf   : > { %537 = vrot.lane.b32.xlu1 %v536_v22, %s1018_s24 }
 0x2d5   : > { %616 = vrot.lane.b32.xlu0 %v615_v24, %s1019_s25  ;;  %s668_s25 = scalar_lea.hbm %s1253_s5, %s858_s16 }
 0x2d6   : > { %s671_s29 = sshll.u32 %s668_s25, 4  ;;  %s672_s29 = int_to_ptr.hbm [resolvable:$true] %s671_s29 }
 0x2d7   : > { %s952_s9 = sshra.s32 %s672_s29, 4  ;;  %s953_s9 = int_to_ptr.hbm [resolvable:$true] %s952_s9 }
 0x2d8   : > { %s954_s11 = scalar_lea.hbm %s953_s9, 32  ;;  %p959_p1 = scmp.lt.s32.totalorder %s953_s9, %s1253_s5 }
 0x2d9   : > { %p955_p12 = scmp.ne.s32.totalorder %s953_s9, %s954_s11  ;;  %p960_p2 = scmp.lt.s32.totalorder %s958_s14, %s954_s11 }
 0x2db   : > { %p956_p13 = pnand %p955_p12, %p1095_p4  ;;  %p961_p3 = por %p960_p2, %p959_p1 }
 0x2dd   : > { %p957_p0 = pneg %p956_p13 }
 0x2df   : > { %p962_p5 = pnand %p961_p3, %p957_p0 }
 0x329   : > { %v528_v27 = vpop.xlane.xlu1 %527 }
 0x32a   : > { %932 = vrcp.f32 %v528_v27 }
 0x32c   : > { %v449_v28 = vpop.xlane.xlu0 %448 }
 0x32d   : > { %934 = vrcp.f32 %v449_v28 }
 0x330   : > { %v933_v29 = vpop.eup %932 }
 0x331   : > { %v530_v30 = vmul.f32 %v933_v29, %v927_v10 }
 0x333   : > { %v935_v31 = vpop.eup %934  ;;  %846 = vst.msk [vmem:[%s1165_s12 + $0x10] sm:$0xff] %vm346_vm0, %v530_v30  ;;  %v533_v39 = vpack.c.bf16 %v530_v30, %v530_v30 }
 0x334   : > { %v607_v32 = vpop.xlane.xlu0 %606  ;;  %v451_v33 = vmul.f32 %v935_v31, %v929_v14 }
 0x335   : > { %936 = vrcp.f32 %v607_v32 }
 0x336   : > { %841 = vst.msk [vmem:[%s1165_s12 + $0x8] sm:$0xff] %vm346_vm0, %v451_v33  ;;  %v454_v34 = vpack.c.bf16 %v451_v33, %v451_v33 }
 0x338   : > { %842 = vmatmul.msk.bf16.vlgmr.msra.gmra.mxu3 %vm346_vm0, %v454_v34 }
 0x33b   : > { %v937_v35 = vpop.eup %936 }
 0x33c   : > { %v609_v36 = vmul.f32 %v937_v35, %v931_v17 }
 0x33e   : > { %851 = vst.msk [vmem:[%s1165_s12 + $0x18] sm:$0xff] %vm346_vm0, %v609_v36  ;;  %v612_v42 = vpack.c.bf16 %v609_v36, %v609_v36 }
 0x341   : > { %v538_v37 = vpop.permute.xlu1 %537 }
 0x342   : > { %v543_v38 = vsel %vm387_vm1, %v538_v37, 0 }
 0x343   : > { %552 = vmatpush.bf16.msrb.mxu3 %v543_v38 }
 0x347   : > { %v617_v40 = vpop.permute.xlu0 %616 }
 0x348   : > { %847 = vmatmul.msk.bf16.vlgmr.msrb.gmra.mxu3 %vm346_vm0, %v533_v39  ;;  %v622_v41 = vsel %vm387_vm1, %v617_v40, 0 }
 0x349   : > { %631 = vmatpush.bf16.msrb.mxu2 %v622_v41 }
 0x34c   : > { %852 = vmatmul.msk.bf16.vlgmr.msrb.gmra.mxu2 %vm346_vm0, %v612_v42 }
 0x3bb   : > { %v475_v43 = vpop.f32.mrf.mxu3 }
 0x3bc   : > { %v479_v44 = vpack.c.bf16 %v475_v43, %v475_v43 }
 0x3be   : > { %481 = vrot.lane.b32.xlu2 %v479_v44, %s1021_s8 }
 0x3c3   : > { %v477_v45 = vpop.f32.mrf.mxu3 }
 0x3c4   : > { %965 = shalt.err (!%p962_p5)
}
 0x3c5   : > { %s1022_s10 = smov 128   ;;  %s1023_s12 = smov 16   ;;  %vm484_vm3 = vcmask 126016   ;;  %vm563_vm4 = vcmask 191616   ;;  %vm642_vm5 = vcmask 257216  }
 0x3c6   : > { %859 = dma.vmem_to_hbm [thread:$0]  (%p1095_p4), %s670_s27, 512, %s672_s29, %s652_s7, %s1022_s10, %s1022_s10, %s1021_s8  }
 0x3c7   : > { %s1024_s24 = smov 24  }
 0x3cb   : > { %v554_v46 = vpop.f32.mrf.mxu3 }
 0x3cc   : > { %v558_v47 = vpack.c.bf16 %v554_v46, %v554_v46 }
 0x3ce   : > { %560 = vrot.lane.b32.xlu2 %v558_v47, %s1023_s12 }
 0x3cf   : > { %v633_v48 = vpop.f32.mrf.mxu2 }
 0x3d0   : > { %v637_v49 = vpack.c.bf16 %v633_v48, %v633_v48 }
 0x3d2   : > { %639 = vrot.lane.b32.xlu0 %v637_v49, %s1024_s24 }
 0x3d3   : > { %v556_v50 = vpop.f32.mrf.mxu3 }
 0x3d7   : > { %v635_v51 = vpop.f32.mrf.mxu2 }
 0x418   : > { %v482_v52 = vpop.permute.xlu2 %481 }
 0x419   : > { %485 = vst.msk [vmem:[%s1178_s15] sm:$0xf] %vm484_vm3, %v482_v52 }
 0x428   : > { %v561_v53 = vpop.permute.xlu2 %560 }
 0x429   : > { %564 = vst.msk [vmem:[%s1178_s15] sm:$0xf] %vm563_vm4, %v561_v53 }
 0x444   : > { %v640_v54 = vpop.permute.xlu0 %639 }
 0x445   : > { %643 = vst.msk [vmem:[%s1178_s15] sm:$0xf] %vm642_vm5, %v640_v54 }
 0x446 PF: > { %p865_p4 = scmp.ge.s32.totalorder %s1016_s23, 2  ;;  %s696_s28 = sand.u32 1, %s996_s18  }
 0x447   : > { %s697_s8 = scalar_lea.sflag [#allocation3], %s696_s28 }
 0x448   : > { %p862_p6 = pnand %p865_p4, %p1102_p8 }
 0x44a   : > { %p863_p7 = pneg %p862_p6 }
 0x44c   : > { %991 = dma.done.wait (%p863_p7), %s697_s8, 512  }
 0x44d   : > { %993 = vsyncadd (%p863_p7), %s697_s8, 4294966784  ;;  %s19_s23 = sadd.s32 1, %s1016_s23   ;;  %s1256_s18 = smov %s1000_s19 }
 0x44e   : > { %p16_p9 = scmp.ge.s32.totalorder %s19_s23, 4   ;;  %s1257_s19 = smov %s1004_s20 }
 0x44f   : > { %s1258_s20 = smov %s1108_s6  ;;  %s1259_s21 = smov %s1012_s22 }
 0x450   : > { %s1260_s22 = smov %s1262_s26  ;;  %18 = sbr.rel (!%p16_p9) target bundleno = 4 (0x4), region = 95 }
 0x455   :  { %703 = vsyncpa [#allocation3], 1 }
 0x456   :  { %705 = vsyncpa [#allocation3 + $0x1], 1 }

// kernel: fwd.21
= control target key start
LH: loop header
LB: loop body
LE: loop exit
PB: predicated region body
PF: predicated region fallthrough
CT: control target
= control target key end

     0   :  { %vm54_vm0 = vcmask 261120   ;;  %s206_s1 = inlined_call_operand.vmem [shape: bf16[32,256], index: 1, kind: input, shape index: {}]   ;;  %s207_s0 = inlined_call_operand.vmem [shape: f32[16,32], index: 0, kind: input, shape index: {}]   ;;  %s208_s2 = inlined_call_operand.vmem [shape: f32[1,256], index: 2, kind: input, shape index: {}]   ;;  %s209_s3 = inlined_call_operand.vmem [shape: f32[16,256], index: 3, kind: output, shape index: {}]  }
   0x1   :  { %v129_v0 = vld [vmem:[%s206_s1 + $0x10] sm:$0xf]  ;;  %v140_v1 = vld [vmem:[%s206_s1 + $0x14] sm:$0xf0]  ;;  %v139_v2 = vld [vmem:[%s206_s1 + $0x14] sm:$0xf] }
   0x2   :  { %v130_v3 = vor.u32 %v140_v1, %v129_v0  ;;  %v131_v4 = vld [vmem:[%s206_s1 + $0x18] sm:$0xf0]  ;;  %v121_v5 = vld [vmem:[%s206_s1] sm:$0xf]  ;;  %v138_v6 = vld [vmem:[%s206_s1 + $0x4] sm:$0xf0] }
   0x3   :  { %v134_v7 = vor.u32 %v139_v2, %v131_v4  ;;  %v137_v8 = vld [vmem:[%s206_s1 + $0x4] sm:$0xf]  ;;  %v123_v9 = vld [vmem:[%s206_s1 + $0x8] sm:$0xf0]  ;;  %v122_v10 = vor.u32 %v138_v6, %v121_v5  ;;  %v101_v15 = vld [vmem:[%s208_s2] sm:$0x3] }
   0x4   :  { %64 = vmatpush.bf16.msra.mxu0 %v130_v3  ;;  %v23_v11 = vld [vmem:[%s207_s0] sm:$0xff]  ;;  %v24_v12 = vld [vmem:[%s207_s0 + $0x8] sm:$0xff]  ;;  %v126_v13 = vor.u32 %v137_v8, %v123_v9  ;;  %v103_v16 = vperm.slane %v101_v15, 0  ;;  %v104_v17 = vperm.slane %v101_v15, 1 }
   0x5   :  { %78 = vmatpush.bf16.msra.mxu1 %v134_v7  ;;  %v25_v14 = vpack.c.bf16 %v24_v12, %v23_v11 }
   0x8   :  { %65 = vmatpush.bf16.msra.mxu0 %v122_v10 }
   0x9   :  { %79 = vmatpush.bf16.msra.mxu1 %v126_v13 }
   0xb   :  { %135 = vmatmul.msk.bf16.vlgmr.msra.gmra.mxu0 %vm54_vm0, %v25_v14 }
   0xc   :  { %136 = vmatmul.msk.bf16.vlgmr.msra.gmra.mxu1 %vm54_vm0, %v25_v14 }
  0x88   :  { %v67_v18 = vpop.f32.mrf.mxu0 }
  0x89   :  { %v107_v19 = vadd.f32 %v103_v16, %v67_v18  ;;  %v81_v20 = vpop.f32.mrf.mxu1 }
  0x8a   :  { %v108_v21 = vadd.f32 %v104_v17, %v81_v20 }
  0x8b   :  { %111 = vst [vmem:[%s209_s3] sm:$0xff] %v107_v19 }
  0x8c   :  { %112 = vst [vmem:[%s209_s3 + $0x8] sm:$0xff] %v108_v21 }
  0x90   :  { %v69_v22 = vpop.f32.mrf.mxu0 }
  0x91   :  { %v109_v23 = vadd.f32 %v103_v16, %v69_v22  ;;  %v83_v24 = vpop.f32.mrf.mxu1 }
  0x92   :  { %v110_v25 = vadd.f32 %v104_v17, %v83_v24 }
  0x93   :  { %113 = vst [vmem:[%s209_s3 + $0x10] sm:$0xff] %v109_v23 }
  0x94   :  { %114 = vst [vmem:[%s209_s3 + $0x18] sm:$0xff] %v110_v25 }

// kernel: fwd.15
= control target key start
LH: loop header
LB: loop body
LE: loop exit
PB: predicated region body
PF: predicated region fallthrough
CT: control target
= control target key end

     0   :  { %vm28_vm0 = vcmask 261120   ;;  %v216_v1 = vmov 0.0   ;;  %vm72_vm1 = vcmask 523264   ;;  %v217_v23 = vmov 32.0   ;;  %s299_s1 = inlined_call_operand.vmem [shape: bf16[64,32], index: 1, kind: input, shape index: {}]   ;;  %s300_s0 = inlined_call_operand.vmem [shape: bf16[16,64], index: 0, kind: input, shape index: {}]   ;;  %s301_s2 = inlined_call_operand.vmem [shape: f32[1,32], index: 2, kind: input, shape index: {}]   ;;  %s302_s3 = inlined_call_operand.vmem [shape: f32[16,32], index: 3, kind: input, shape index: {}]   ;;  %s303_s4 = inlined_call_operand.vmem [shape: f32[1,32], index: 4, kind: input, shape index: {}]   ;;  %s304_s5 = inlined_call_operand.vmem [shape: f32[1,32], index: 5, kind: input, shape index: {}]   ;;  %s305_s6 = inlined_call_operand.vmem [shape: f32[16,32], index: 6, kind: output, shape index: {}]  }
   0x1   :  { %v204_v0 = vld [vmem:[%s299_s1 + $0x18] sm:$0xff]  ;;  %29 = vst.msk [vmem:[#allocation2] sm:$0xff] %vm28_vm0, %v216_v1  ;;  %v203_v2 = vld [vmem:[%s299_s1 + $0x10] sm:$0xff]  ;;  %v202_v3 = vld [vmem:[%s299_s1 + $0x8] sm:$0xff]  ;;  %210 = vrcp.f32 %v217_v23 }
   0x2   :  { %30 = vst.msk [vmem:[#allocation2 + $0x8] sm:$0xff] %vm28_vm0, %v216_v1  ;;  %80 = vmatpush.bf16.msra.mxu0 %v204_v0  ;;  %v201_v4 = vld [vmem:[%s299_s1] sm:$0xff]  ;;  %v107_v19 = vld [vmem:[%s302_s3 + $0x8] sm:$0xff] }
   0x3   :  { %v200_v5 = vld [vmem:[%s300_s0] sm:$0xff] }
   0x4   :  { %v207_v10 = vld [vmem:[%s301_s2] ss:$0 sm:$0xff] }
   0x5   :  { %v106_v14 = vld [vmem:[%s302_s3] sm:$0xff] }
   0x6   :  { %81 = vmatpush.bf16.msra.mxu0 %v203_v2  ;;  %v208_v54 = vld [vmem:[%s303_s4] ss:$0 sm:$0xff] }
   0x7   :  { %v211_v24 = vpop.eup %210  ;;  %v209_v57 = vld [vmem:[%s304_s5] ss:$0 sm:$0xff] }
   0x8   :  { %v41_v6 = vld [vmem:[#allocation2] sm:$0xff]  ;;  %v117_v25 = vmul.f32 32.0, %v211_v24  ;;  %vm121_vm2 = vweird.f32 %v211_v24 }
   0x9   :  { %v42_v9 = vld [vmem:[#allocation2 + $0x8] sm:$0xff] }
   0xa   :  { %82 = vmatpush.bf16.msra.mxu0 %v202_v3  ;;  %v118_v26 = vsub.f32 1.0, %v117_v25 }
   0xc   :  { %v119_v27 = vmul.f32 %v211_v24, %v118_v26 }
   0xe   :  { %83 = vmatpush.bf16.msra.mxu0 %v201_v4  ;;  %v120_v28 = vadd.f32 %v211_v24, %v119_v27 }
  0x10   :  { %v122_v29 = vsel %vm121_vm2, %v211_v24, %v120_v28 }
  0x11   :  { %199 = vmatmul.msk.bf16.vlgmr.msra.gmra.mxu0 %vm72_vm1, %v200_v5 }
  0x8e   :  { %v85_v7 = vpop.f32.mrf.mxu0 }
  0x8f   :  { %v90_v8 = vadd.f32 %v85_v7, %v41_v6 }
  0x91   :  { %93 = vst.msk [vmem:[#allocation2] sm:$0xff] %vm28_vm0, %v90_v8 }
  0x96   :  { %v87_v11 = vpop.f32.mrf.mxu0 }
  0x97   :  { %v91_v12 = vadd.f32 %v87_v11, %v42_v9 }
  0x98   :  { %v98_v13 = vld [vmem:[#allocation2] sm:$0xff] }
  0x99   :  { %94 = vst.msk [vmem:[#allocation2 + $0x8] sm:$0xff] %vm28_vm0, %v91_v12  ;;  %v104_v15 = vadd.f32 %v207_v10, %v98_v13 }
  0x9b   :  { %v108_v16 = vadd.f32 %v106_v14, %v104_v15 }
  0x9d   :  { %v110_v17 = vsel %vm28_vm0, %v108_v16, 0.0 }
  0x9e   :  { %111 = vadd.xlane.f32.xlu0 %v110_v17 }
  0xa0   :  { %v99_v18 = vld [vmem:[#allocation2 + $0x8] sm:$0xff] }
  0xa1   :  { %v105_v20 = vadd.f32 %v207_v10, %v99_v18 }
  0xa3   :  { %v109_v21 = vadd.f32 %v107_v19, %v105_v20 }
  0xa5   :  { %v113_v22 = vsel %vm28_vm0, %v109_v21, 0.0 }
  0xa6   :  { %114 = vadd.xlane.f32.xlu0 %v113_v22 }
 0x111   :  { %v112_v30 = vpop.xlane.xlu0 %111 }
 0x112   :  { %v123_v31 = vmul.f32 %v122_v29, %v112_v30 }
 0x114   :  { %v125_v32 = vsub.f32 %v108_v16, %v123_v31 }
 0x116   :  { %v127_v33 = vmul.f32 %v125_v32, %v125_v32 }
 0x118   :  { %v129_v34 = vsel %vm28_vm0, %v127_v33, 0.0 }
 0x119   :  { %130 = vadd.xlane.f32.xlu1 %v129_v34  ;;  %v115_v35 = vpop.xlane.xlu0 %114 }
 0x11a   :  { %v124_v36 = vmul.f32 %v122_v29, %v115_v35 }
 0x11c   :  { %v126_v37 = vsub.f32 %v109_v21, %v124_v36 }
 0x11e   :  { %v128_v38 = vmul.f32 %v126_v37, %v126_v37 }
 0x120   :  { %v132_v39 = vsel %vm28_vm0, %v128_v38, 0.0 }
 0x121   :  { %133 = vadd.xlane.f32.xlu1 %v132_v39 }
 0x18c   :  { %v131_v40 = vpop.xlane.xlu1 %130 }
 0x18d   :  { %v135_v41 = vmul.f32 %v131_v40, %v122_v29 }
 0x18f   :  { %v137_v42 = vadd.f32 1e-12, %v135_v41 }
 0x191   :  { %212 = vrsqrt.f32 %v137_v42  ;;  %vm145_vm4 = vweird.f32 %v137_v42 }
 0x194   :  { %v134_v43 = vpop.xlane.xlu1 %133 }
 0x195   :  { %v136_v44 = vmul.f32 %v134_v43, %v122_v29 }
 0x197   :  { %v213_v45 = vpop.eup %212  ;;  %v138_v46 = vadd.f32 1e-12, %v136_v44 }
 0x198   :  { %v140_v47 = vmul.f32 %v213_v45, %v137_v42  ;;  %vm146_vm3 = vweird.f32 %v213_v45 }
 0x199   :  { %214 = vrsqrt.f32 %v138_v46  ;;  %vm147_vm5 = vmor %vm145_vm4, %vm146_vm3  ;;  %vm155_vm7 = vweird.f32 %v138_v46 }
 0x19a   :  { %v141_v48 = vmul.f32 %v213_v45, %v140_v47 }
 0x19c   :  { %v142_v49 = vmul.f32 0.5, %v141_v48 }
 0x19e   :  { %v143_v50 = vsub.f32 1.5, %v142_v49 }
 0x19f   :  { %v215_v51 = vpop.eup %214 }
 0x1a0   :  { %v144_v52 = vmul.f32 %v213_v45, %v143_v50  ;;  %v150_v53 = vmul.f32 %v215_v51, %v138_v46  ;;  %vm156_vm6 = vweird.f32 %v215_v51 }
 0x1a1   :  { %vm157_vm8 = vmor %vm155_vm7, %vm156_vm6 }
 0x1a2   :  { %v148_v55 = vsel %vm147_vm5, %v213_v45, %v144_v52  ;;  %v151_v56 = vmul.f32 %v215_v51, %v150_v53 }
 0x1a3   :  { %v159_v58 = vmul.f32 %v148_v55, %v125_v32 }
 0x1a4   :  { %v152_v59 = vmul.f32 0.5, %v151_v56 }
 0x1a5   :  { %v165_v60 = vmul.f32 %v208_v54, %v159_v58 }
 0x1a6   :  { %v153_v61 = vsub.f32 1.5, %v152_v59 }
 0x1a7   :  { %v171_v62 = vadd.f32 %v209_v57, %v165_v60 }
 0x1a8   :  { %v154_v63 = vmul.f32 %v215_v51, %v153_v61 }
 0x1a9   :  { %173 = vst.msk [vmem:[%s305_s6] sm:$0xff] %vm28_vm0, %v171_v62 }
 0x1aa   :  { %v158_v0 = vsel %vm157_vm8, %v215_v51, %v154_v63 }
 0x1ab   :  { %v160_v1 = vmul.f32 %v158_v0, %v126_v37 }
 0x1ad   :  { %v166_v2 = vmul.f32 %v208_v54, %v160_v1 }
 0x1af   :  { %v172_v3 = vadd.f32 %v209_v57, %v166_v2 }
 0x1b1   :  { %174 = vst.msk [vmem:[%s305_s6 + $0x8] sm:$0xff] %vm28_vm0, %v172_v3 }

</bundles_post_ra>
